<compile_context>
chip_gen: v7x
topology: tpu7x:2x2x1
jax: 0.10.0
libtpu: 0.0.40
codegen_flags: <defaults>
</compile_context>

<pallas_src>
import functools

import jax
import jax.numpy as jnp
import numpy as np
from jax.experimental import pallas as pl
from jax.experimental.pallas import tpu as pltpu


_LANE = 128
_PALLAS_MIN_ELEMS = 1 << 16   # below this, a fused jnp elementwise op beats a kernel launch


# ---------------------------------------------------------------------------
# Projection-set construction (exactly mirrors build_power_value in the module)
# ---------------------------------------------------------------------------
def build_power_value(B=2, additive=True):
    base_a = [0.0]
    base_b = [0.0]
    base_c = [0.0]
    if additive:
        if B == 2:
            for i in range(3):
                base_a.append(2 ** (-i - 1))
        elif B == 4:
            for i in range(3):
                base_a.append(2 ** (-2 * i - 1))
                base_b.append(2 ** (-2 * i - 2))
        elif B == 6:
            for i in range(3):
                base_a.append(2 ** (-3 * i - 1))
                base_b.append(2 ** (-3 * i - 2))
                base_c.append(2 ** (-3 * i - 3))
        elif B == 3:
            for i in range(3):
                if i < 2:
                    base_a.append(2 ** (-i - 1))
                else:
                    base_b.append(2 ** (-i - 1))
                    base_a.append(2 ** (-i - 2))
        elif B == 5:
            for i in range(3):
                if i < 2:
                    base_a.append(2 ** (-2 * i - 1))
                    base_b.append(2 ** (-2 * i - 2))
                else:
                    base_c.append(2 ** (-2 * i - 1))
                    base_a.append(2 ** (-2 * i - 2))
                    base_b.append(2 ** (-2 * i - 3))
        else:
            pass
    else:
        for i in range(2 ** B - 1):
            base_a.append(2 ** (-i - 1))
    values = []
    for a in base_a:
        for b in base_b:
            for c in base_c:
                values.append(a + b + c)
    values = sorted(set(values))  # dedup like torch; sorted for determinism
    values = np.asarray(values, dtype=np.float32)
    values = values * np.float32(1.0 / values.max())
    return values


def _proj_tables(proj_set):
    """Sorted projection values + decision midpoints (compile-time constants)."""
    vals = sorted(float(v) for v in np.asarray(proj_set, dtype=np.float32))
    mids = tuple((vals[i] + vals[i + 1]) * 0.5 for i in range(len(vals) - 1))
    return tuple(vals), mids


# ---------------------------------------------------------------------------
# Quantization formula (shared by the Pallas kernel and the small-tensor path)
# ---------------------------------------------------------------------------
def _quantize_jax(x, alpha, vals, mids, mode):
    """Pure-jnp implementation of the exact formula used by the kernel."""
    a = alpha[0]
    xf = x.astype(jnp.float32)
    if mode == "uq":
        q = jnp.round(jnp.clip(xf * (1.0 / a), -1.0, 1.0)) * a
    else:
        mag = jnp.abs(xf) if mode == "apot_weight" else xf
        q = jnp.zeros(mag.shape, jnp.float32)
        if float(vals[0]) != 0.0:
            q = q + a * jnp.float32(vals[0])
        for m, v_hi in zip(mids, vals[1:]):
            q = jnp.where(mag > a * jnp.float32(m), a * jnp.float32(v_hi), q)
        if mode == "apot_weight":
            q = jnp.where(xf < 0.0, -q, q)
    return q.astype(x.dtype)


def _make_quant_kernel(vals, mids, mode):
    """vals/mids: tuples of python floats (compile-time constants, sorted).
    mode: 'apot_act' | 'apot_weight' | 'uq'."""

    def kernel(alpha_ref, x_ref, o_ref):
        alpha = alpha_ref[0]                       # scalar threshold from SMEM
        x = x_ref[...].astype(jnp.float32)

        if mode == "uq":
            # _uq forward: clamp to [-1, 1], round, rescale (scalar reciprocal,
            # one VPU multiply instead of a per-element divide).
            d = x * (1.0 / alpha)
            q = jnp.round(jnp.clip(d, -1.0, 1.0)) * alpha
        else:
            mag = jnp.abs(x) if mode == "apot_weight" else x
            # alpha is folded into the decision thresholds / output levels:
            # scalar-only work per grid step, which deletes the x*(1/alpha) and
            # q*alpha vector multiplies.  The sorted-midpoint where-chain
            # saturates below the first and above the last midpoint, so the
            # reference's clamp is redundant and dropped.  Strict '>' keeps the
            # tie-to-the-lower-value behaviour of an ascending argmin.
            q = jnp.zeros(mag.shape, jnp.float32)
            if float(vals[0]) != 0.0:
                q = q + alpha * jnp.float32(vals[0])
            for m, v_hi in zip(mids, vals[1:]):
                q = jnp.where(mag > alpha * jnp.float32(m),
                              alpha * jnp.float32(v_hi), q)
            if mode == "apot_weight":
                # bitwise copysign: cheaper than sign() + multiply (projection
                # values are all >= 0, so OR-ing x's sign bit is exact).
                sign_bit = pltpu.bitcast(x, jnp.uint32) & jnp.uint32(0x80000000)
                q = pltpu.bitcast(pltpu.bitcast(q, jnp.uint32) | sign_bit,
                                  jnp.float32)

        o_ref[...] = q.astype(o_ref.dtype)

    return kernel


# ---------------------------------------------------------------------------
# Tiling / dispatch
# ---------------------------------------------------------------------------
def _round_up8(v):
    return ((v + 7) // 8) * 8


def _choose_block_rows(rows, max_block_rows=4096, min_block_rows=256, target_steps=4):
    """Row-block size (multiple of 8): aim for ~target_steps grid steps (pipeline
    overlap + both v7x TensorCores), never shrink blocks below min_block_rows
    (per-step overhead ~0.35us) and never above max_block_rows (2 MiB f32 tiles;
    4 double-buffered tiles stay well inside every generation's scoped VMEM)."""
    br = _round_up8(-(-rows // target_steps))
    br = min(br, max_block_rows)
    br = max(br, min(min_block_rows, _round_up8(rows)))
    return br


@functools.partial(jax.jit,
                   static_argnames=("vals", "mids", "mode", "min_pallas_elems"))
def _apot_quantize_impl(x, alpha, *, vals, mids, mode, min_pallas_elems):
    n = x.size
    if n < min_pallas_elems:
        # Small-tensor fast path: one fused XLA elementwise op, no launch / pad.
        return _quantize_jax(x, alpha, vals, mids, mode)

    orig_shape = x.shape
    flat = x.reshape(-1)
    n_main = (n // _LANE) * _LANE
    rows = n_main // _LANE
    if rows == 0:
        return _quantize_jax(x, alpha, vals, mids, mode)

    x2 = (flat if n_main == n else flat[:n_main]).reshape(rows, _LANE)
    block_rows = _choose_block_rows(rows)
    grid = (pl.cdiv(rows, block_rows),)   # ragged last block handled by Pallas

    tile_bytes = block_rows * _LANE * x2.dtype.itemsize
    # 2x double-buffered input + 2x output + headroom; explicit so bigger tiles
    # never trip v5e's 16 MiB scoped default or v7x's 64 MiB part.
    vmem_limit = int(min(max(6 * tile_bytes, 8 << 20), 32 << 20))

    kernel = _make_quant_kernel(vals, mids, mode)
    out2 = pl.pallas_call(
        kernel,
        out_shape=jax.ShapeDtypeStruct((rows, _LANE), x.dtype),
        grid=grid,
        in_specs=[
            pl.BlockSpec(memory_space=pltpu.MemorySpace.SMEM),      # alpha (1,)
            pl.BlockSpec((block_rows, _LANE), lambda i: (i, 0)),    # x tile
        ],
        out_specs=pl.BlockSpec((block_rows, _LANE), lambda i: (i, 0)),
        compiler_params=pltpu.CompilerParams(
            dimension_semantics=("parallel",),
            vmem_limit_bytes=vmem_limit,
        ),
    )(alpha, x2)

    if n_main == n:
        return out2.reshape(orig_shape)
    # <128-element tail quantized in jnp; no full-tensor pad/slice round-trip.
    tail = _quantize_jax(flat[n_main:], alpha, vals, mids, mode)
    return jnp.concatenate([out2.reshape(-1), tail]).reshape(orig_shape)


def apot_quantize(x, alpha, proj_set, mode, min_pallas_elems=_PALLAS_MIN_ELEMS):
    """x: arbitrary-shape float array. alpha: shape-(1,) float32 (must be > 0,
    as asserted by the PyTorch reference; no device->host sync is done here).
    proj_set: 1-D array of projection values, or None when mode == 'uq'."""
    if mode == "uq":
        vals, mids = (), ()
    else:
        vals, mids = _proj_tables(proj_set)
    alpha = jnp.asarray(alpha, jnp.float32).reshape(1)
    return _apot_quantize_impl(x, alpha, vals=vals, mids=mids, mode=mode,
                               min_pallas_elems=int(min_pallas_elems))


# ---------------------------------------------------------------------------
# APoT_quantizer module (JAX / Pallas version, forward only)
# ---------------------------------------------------------------------------
class APoTQuantizerPallas:
    def __init__(self, num_bits, mode, first_layer=False):
        self.bit = num_bits
        if mode == "activation":
            if first_layer:
                self.Qn = 2 ** (num_bits - 1) - 1
                self.Qp = 2 ** (num_bits - 1) - 1
                self.proj_set = build_power_value(B=self.bit - 1) if self.bit > 2 else None
                self.is_weight = True
            else:
                self.Qn = 0
                self.Qp = 2 ** num_bits - 1
                self.proj_set = build_power_value(B=self.bit)
                self.is_weight = False
        elif mode == "weight":
            self.Qn = 2 ** (num_bits - 1) - 1
            self.Qp = 2 ** (num_bits - 1) - 1
            self.proj_set = build_power_value(B=self.bit - 1) if self.bit > 2 else None
            self.is_weight = True
        else:
            raise ValueError(mode)
        # nn.Parameter(torch.tensor([0.0])) equivalent
        self.threshold = jnp.zeros((1,), jnp.float32)

    def scale_to_Qparms(self, init_scale):
        self.threshold = jnp.asarray(init_scale, jnp.float32).reshape(1) * jnp.float32(self.Qp)

    def forward(self, x, num_elements, grad_scale_mode="none"):
        alpha = self.threshold
        # NOTE: threshold must be > 0 (reference asserts); no host-side assert to
        # avoid a device->host sync on every call.
        # NOTE: num_elements / grad_scale_mode only affect the backward pass.
        if self.is_weight and self.bit == 2:
            return apot_quantize(x, alpha, None, mode="uq")
        mode = "apot_weight" if self.is_weight else "apot_act"
        return apot_quantize(x, alpha, self.proj_set, mode=mode)


# ---------------------------------------------------------------------------
# Pure-JAX references (torch semantics: argmin over |d - proj|) for small tensors.
# For the large (Pallas-path) tensors we check against _quantize_jax, which is the
# same formula evaluated by plain XLA: that validates the kernel lowering exactly,
# without the measure-zero midpoint tie-break differences of the argmin reference.
# ---------------------------------------------------------------------------
def apot_ref(x, alpha, proj_set, is_weight):
    a = alpha[0]
    d = x.astype(jnp.float32) / a
    if is_weight:
        d = jnp.clip(d, -1.0, 1.0)
        sign = jnp.sign(d)
        ad = jnp.abs(d)
    else:
        d = jnp.clip(d, 0.0, 1.0)
        ad = d
    proj = jnp.asarray(np.asarray(proj_set, np.float32))
    idx = jnp.argmin(jnp.abs(ad[..., None] - proj), axis=-1)
    q = proj[idx]
    if is_weight:
        q = q * sign
    return (q * a).astype(x.dtype)


def uq_ref(x, alpha):
    a = alpha[0]
    return jnp.round(jnp.clip(x / a, -1.0, 1.0)) * a


if __name__ == "__main__":
    key = jax.random.PRNGKey(0)
    k1, k2, k3, k4, k5 = jax.random.split(key, 5)

    # --- 1) Pallas path: activation quantizer, lane-aligned tensor (131072 elems) ---
    x_big = jax.random.uniform(k1, (8, 64, 16, 16), jnp.float32, 0.0, 2.0)
    q_act = APoTQuantizerPallas(num_bits=4, mode="activation", first_layer=False)
    q_act.scale_to_Qparms(jnp.float32(0.05))          # threshold = 0.05 * Qp = 0.75
    out_big = jax.block_until_ready(
        q_act.forward(x_big, num_elements=x_big.size, grad_scale_mode="LSQ_grad_scale"))
    vals_a, mids_a = _proj_tables(q_act.proj_set)
    ref_big = _quantize_jax(x_big, q_act.threshold, vals_a, mids_a, "apot_act")
    assert out_big.shape == x_big.shape and out_big.dtype == x_big.dtype
    assert jnp.allclose(out_big, ref_big, atol=1e-6), "pallas activation path mismatch"

    # --- 2) Pallas path: weight quantizer, unaligned element count (136188 elems) ---
    w_big = 0.1 * jax.random.normal(k2, (4, 97, 13, 27), jnp.float32)
    q_wbig = APoTQuantizerPallas(num_bits=4, mode="weight")
    q_wbig.scale_to_Qparms(jnp.float32(0.02))         # threshold = 0.02 * Qp = 0.14
    out_wbig = jax.block_until_ready(
        q_wbig.forward(w_big, num_elements=w_big.size, grad_scale_mode="LSQ_grad_scale"))
    vals_w, mids_w = _proj_tables(q_wbig.proj_set)
    ref_wbig = _quantize_jax(w_big, q_wbig.threshold, vals_w, mids_w, "apot_weight")
    assert jnp.allclose(out_wbig, ref_wbig, atol=1e-6), "pallas weight path mismatch"

    # --- 3) small activation tensor (fast path) vs torch-semantics argmin ref ---
    x_small = jax.random.uniform(k3, (2, 4, 16, 16), jnp.float32, 0.0, 2.0)
    out_small = jax.block_until_ready(
        q_act.forward(x_small, num_elements=x_small.size, grad_scale_mode="LSQ_grad_scale"))
    ref_small = apot_ref(x_small, q_act.threshold, q_act.proj_set, is_weight=False)
    assert jnp.allclose(out_small, ref_small, atol=1e-6), "small activation mismatch"

    # --- 4) small weight tensor (fast path) vs torch-semantics argmin ref ---
    w = 0.1 * jax.random.normal(k4, (8, 4, 3, 3), jnp.float32)
    q_w = APoTQuantizerPallas(num_bits=4, mode="weight")
    q_w.scale_to_Qparms(jnp.float32(0.02))
    out_w = jax.block_until_ready(
        q_w.forward(w, num_elements=w.size, grad_scale_mode="LSQ_grad_scale"))
    ref_w = apot_ref(w, q_w.threshold, q_w.proj_set, is_weight=True)
    assert jnp.allclose(out_w, ref_w, atol=1e-6), "small weight mismatch"

    # --- 5) 2-bit weight quantizer -> _uq round path ---
    w2 = 0.05 * jax.random.normal(k5, (8, 4, 3, 3), jnp.float32)
    q_w2 = APoTQuantizerPallas(num_bits=2, mode="weight")
    q_w2.scale_to_Qparms(jnp.float32(0.03))
    out_w2 = jax.block_until_ready(
        q_w2.forward(w2, num_elements=w2.size, grad_scale_mode="LSQ_grad_scale"))
    ref_w2 = uq_ref(w2, q_w2.threshold)
    assert jnp.allclose(out_w2, ref_w2, atol=1e-6), "uq path mismatch"

    print("KERNEL_OK")
</pallas_src>

<mosaic_0001>
module attributes {stable_mosaic.version = 11 : i64} {
  func.func @kernel(%arg0: i32, %arg1: memref<1xf32, #tpu.memory_space<smem>>, %arg2: memref<256x128xf32, #tpu.memory_space<vmem>>, %arg3: memref<256x128xf32, #tpu.memory_space<vmem>>) attributes {dimension_semantics = [#tpu.dimension_semantics<parallel>], iteration_bounds = array<i64: 4>, scalar_prefetch = 0 : i64, scratch_operands = 0 : i64, tpu.core_type = #tpu.core_type<tc>, window_params = [{transform_indices = @transform_0, window_bounds = array<i64: 1>}, {transform_indices = @transform_1, window_bounds = array<i64: 256, 128>}, {transform_indices = @transform_2, window_bounds = array<i64: 256, 128>}]} {
    %c0 = arith.constant 0 : index
    %0 = memref.load %arg1[%c0] : memref<1xf32, #tpu.memory_space<smem>>
    %c0_0 = arith.constant 0 : index
    %c0_1 = arith.constant 0 : index
    %1 = vector.load %arg2[%c0_0, %c0_1] : memref<256x128xf32, #tpu.memory_space<vmem>>, vector<256x128xf32>
    %cst = arith.constant 0.000000e+00 : f32
    %2 = vector.broadcast %cst : f32 to vector<256x128xf32>
    %cst_2 = arith.constant 0.010416667 : f32
    %3 = arith.mulf %0, %cst_2 : f32
    %4 = vector.broadcast %3 : f32 to vector<256x128xf32>
    %5 = arith.cmpf ogt, %1, %4 : vector<256x128xf32>
    %cst_3 = arith.constant 0.020833334 : f32
    %6 = arith.mulf %0, %cst_3 : f32
    %7 = vector.broadcast %6 : f32 to vector<256x128xf32>
    %8 = arith.select %5, %7, %2 : vector<256x128xi1>, vector<256x128xf32>
    %cst_4 = arith.constant 3.125000e-02 : f32
    %9 = arith.mulf %0, %cst_4 : f32
    %10 = vector.broadcast %9 : f32 to vector<256x128xf32>
    %11 = arith.cmpf ogt, %1, %10 : vector<256x128xf32>
    %cst_5 = arith.constant 0.0416666679 : f32
    %12 = arith.mulf %0, %cst_5 : f32
    %13 = vector.broadcast %12 : f32 to vector<256x128xf32>
    %14 = arith.select %11, %13, %8 : vector<256x128xi1>, vector<256x128xf32>
    %cst_6 = arith.constant 0.0520833358 : f32
    %15 = arith.mulf %0, %cst_6 : f32
    %16 = vector.broadcast %15 : f32 to vector<256x128xf32>
    %17 = arith.cmpf ogt, %1, %16 : vector<256x128xf32>
    %cst_7 = arith.constant 6.250000e-02 : f32
    %18 = arith.mulf %0, %cst_7 : f32
    %19 = vector.broadcast %18 : f32 to vector<256x128xf32>
    %20 = arith.select %17, %19, %14 : vector<256x128xi1>, vector<256x128xf32>
    %cst_8 = arith.constant 0.0729166716 : f32
    %21 = arith.mulf %0, %cst_8 : f32
    %22 = vector.broadcast %21 : f32 to vector<256x128xf32>
    %23 = arith.cmpf ogt, %1, %22 : vector<256x128xf32>
    %cst_9 = arith.constant 0.0833333358 : f32
    %24 = arith.mulf %0, %cst_9 : f32
    %25 = vector.broadcast %24 : f32 to vector<256x128xf32>
    %26 = arith.select %23, %25, %20 : vector<256x128xi1>, vector<256x128xf32>
    %cst_10 = arith.constant 0.104166672 : f32
    %27 = arith.mulf %0, %cst_10 : f32
    %28 = vector.broadcast %27 : f32 to vector<256x128xf32>
    %29 = arith.cmpf ogt, %1, %28 : vector<256x128xf32>
    %cst_11 = arith.constant 1.250000e-01 : f32
    %30 = arith.mulf %0, %cst_11 : f32
    %31 = vector.broadcast %30 : f32 to vector<256x128xf32>
    %32 = arith.select %29, %31, %26 : vector<256x128xi1>, vector<256x128xf32>
    %cst_12 = arith.constant 0.145833343 : f32
    %33 = arith.mulf %0, %cst_12 : f32
    %34 = vector.broadcast %33 : f32 to vector<256x128xf32>
    %35 = arith.cmpf ogt, %1, %34 : vector<256x128xf32>
    %cst_13 = arith.constant 0.166666672 : f32
    %36 = arith.mulf %0, %cst_13 : f32
    %37 = vector.broadcast %36 : f32 to vector<256x128xf32>
    %38 = arith.select %35, %37, %32 : vector<256x128xi1>, vector<256x128xf32>
    %cst_14 = arith.constant 0.177083343 : f32
    %39 = arith.mulf %0, %cst_14 : f32
    %40 = vector.broadcast %39 : f32 to vector<256x128xf32>
    %41 = arith.cmpf ogt, %1, %40 : vector<256x128xf32>
    %cst_15 = arith.constant 1.875000e-01 : f32
    %42 = arith.mulf %0, %cst_15 : f32
    %43 = vector.broadcast %42 : f32 to vector<256x128xf32>
    %44 = arith.select %41, %43, %38 : vector<256x128xi1>, vector<256x128xf32>
    %cst_16 = arith.constant 2.187500e-01 : f32
    %45 = arith.mulf %0, %cst_16 : f32
    %46 = vector.broadcast %45 : f32 to vector<256x128xf32>
    %47 = arith.cmpf ogt, %1, %46 : vector<256x128xf32>
    %cst_17 = arith.constant 2.500000e-01 : f32
    %48 = arith.mulf %0, %cst_17 : f32
    %49 = vector.broadcast %48 : f32 to vector<256x128xf32>
    %50 = arith.select %47, %49, %44 : vector<256x128xi1>, vector<256x128xf32>
    %cst_18 = arith.constant 0.291666687 : f32
    %51 = arith.mulf %0, %cst_18 : f32
    %52 = vector.broadcast %51 : f32 to vector<256x128xf32>
    %53 = arith.cmpf ogt, %1, %52 : vector<256x128xf32>
    %cst_19 = arith.constant 0.333333343 : f32
    %54 = arith.mulf %0, %cst_19 : f32
    %55 = vector.broadcast %54 : f32 to vector<256x128xf32>
    %56 = arith.select %53, %55, %50 : vector<256x128xi1>, vector<256x128xf32>
    %cst_20 = arith.constant 0.354166687 : f32
    %57 = arith.mulf %0, %cst_20 : f32
    %58 = vector.broadcast %57 : f32 to vector<256x128xf32>
    %59 = arith.cmpf ogt, %1, %58 : vector<256x128xf32>
    %cst_21 = arith.constant 3.750000e-01 : f32
    %60 = arith.mulf %0, %cst_21 : f32
    %61 = vector.broadcast %60 : f32 to vector<256x128xf32>
    %62 = arith.select %59, %61, %56 : vector<256x128xi1>, vector<256x128xf32>
    %cst_22 = arith.constant 4.375000e-01 : f32
    %63 = arith.mulf %0, %cst_22 : f32
    %64 = vector.broadcast %63 : f32 to vector<256x128xf32>
    %65 = arith.cmpf ogt, %1, %64 : vector<256x128xf32>
    %cst_23 = arith.constant 5.000000e-01 : f32
    %66 = arith.mulf %0, %cst_23 : f32
    %67 = vector.broadcast %66 : f32 to vector<256x128xf32>
    %68 = arith.select %65, %67, %62 : vector<256x128xi1>, vector<256x128xf32>
    %cst_24 = arith.constant 0.583333373 : f32
    %69 = arith.mulf %0, %cst_24 : f32
    %70 = vector.broadcast %69 : f32 to vector<256x128xf32>
    %71 = arith.cmpf ogt, %1, %70 : vector<256x128xf32>
    %cst_25 = arith.constant 0.666666686 : f32
    %72 = arith.mulf %0, %cst_25 : f32
    %73 = vector.broadcast %72 : f32 to vector<256x128xf32>
    %74 = arith.select %71, %73, %68 : vector<256x128xi1>, vector<256x128xf32>
    %cst_26 = arith.constant 0.677083373 : f32
    %75 = arith.mulf %0, %cst_26 : f32
    %76 = vector.broadcast %75 : f32 to vector<256x128xf32>
    %77 = arith.cmpf ogt, %1, %76 : vector<256x128xf32>
    %cst_27 = arith.constant 6.875000e-01 : f32
    %78 = arith.mulf %0, %cst_27 : f32
    %79 = vector.broadcast %78 : f32 to vector<256x128xf32>
    %80 = arith.select %77, %79, %74 : vector<256x128xi1>, vector<256x128xf32>
    %cst_28 = arith.constant 7.187500e-01 : f32
    %81 = arith.mulf %0, %cst_28 : f32
    %82 = vector.broadcast %81 : f32 to vector<256x128xf32>
    %83 = arith.cmpf ogt, %1, %82 : vector<256x128xf32>
    %cst_29 = arith.constant 7.500000e-01 : f32
    %84 = arith.mulf %0, %cst_29 : f32
    %85 = vector.broadcast %84 : f32 to vector<256x128xf32>
    %86 = arith.select %83, %85, %80 : vector<256x128xi1>, vector<256x128xf32>
    %cst_30 = arith.constant 8.750000e-01 : f32
    %87 = arith.mulf %0, %cst_30 : f32
    %88 = vector.broadcast %87 : f32 to vector<256x128xf32>
    %89 = arith.cmpf ogt, %1, %88 : vector<256x128xf32>
    %cst_31 = arith.constant 1.000000e+00 : f32
    %90 = arith.mulf %0, %cst_31 : f32
    %91 = vector.broadcast %90 : f32 to vector<256x128xf32>
    %92 = arith.select %89, %91, %86 : vector<256x128xi1>, vector<256x128xf32>
    %c0_32 = arith.constant 0 : index
    %c0_33 = arith.constant 0 : index
    %93 = vector.load %arg3[%c0_32, %c0_33] : memref<256x128xf32, #tpu.memory_space<vmem>>, vector<256x128xf32>
    tpu.vector_store %arg3[%c0_32, %c0_33], %92 {strides = array<i32>} : memref<256x128xf32, #tpu.memory_space<vmem>>, vector<256x128xf32>,
    return
  }
  func.func @transform_0(%arg0: i32) -> i32 {
    %c0_i32 = arith.constant 0 : i32
    %c0_i32_0 = arith.constant 0 : i32
    return %c0_i32 : i32
  }
  func.func @transform_1(%arg0: i32) -> (i32, i32) {
    %c0_i32 = arith.constant 0 : i32
    %c0_i32_0 = arith.constant 0 : i32
    return %arg0, %c0_i32 : i32, i32
  }
  func.func @transform_2(%arg0: i32) -> (i32, i32) {
    %c0_i32 = arith.constant 0 : i32
    %c0_i32_0 = arith.constant 0 : i32
    return %arg0, %c0_i32 : i32, i32
  }
}

</mosaic_0001>

<bundles_post_ra>
// kernel: _apot_quantize_impl.1
= control target key start
LH: loop header
LB: loop body
LE: loop exit
PB: predicated region body
PF: predicated region fallthrough
CT: control target
= control target key end

     0   :  { %s1333_s11 = smov 0   ;;  %s3385_s0 = inlined_call_operand.<no memory space> [shape: f32[1], index: 0, kind: input, shape index: {}]   ;;  %s3386_s1 = inlined_call_operand.vmem [shape: f32[1024,128], index: 1, kind: input, shape index: {}]   ;;  %s3387_s2 = inlined_call_operand.vmem [shape: f32[1024,128], index: 2, kind: output, shape index: {}]  }
   0x1   :  { %7 = sst [smem:[#allocation2]] %s3385_s0 }
   0x2 LB: > { %s1288_s12 = sadd.s32 4294967295, %s1313_s11   ;;  %p1292_p0 = scmp.ge.s32.totalorder %s1313_s11, 1  ;;  %s1313_s11 = sphi %s1333_s11, %s13_s11  }
   0x3   : > { %p114_p1 = scmp.lt.s32.totalorder %s1313_s11, 5 }
   0x5   : > { %p115_p2 = pnand %p1292_p0, %p114_p1 }
   0x6   : > { %s1293_s13 = sshll.u32 (!%p115_p2), %s1288_s12, 5  ;;  %s1341_s14 = sld [smem:[#allocation2]] (!%p115_p2) }
   0x7   : > { %118 = sbr.rel (%p115_p2) target bundleno = 270 (0x10e), region = 28  ;;  %p137_p3 = scmp.lt.s32.totalorder (!%p115_p2), %s1293_s13, 127 }
   0xc   : > { %s181_s18 = smul.f32 (!%p115_p2), 0.010416667, %s1341_s14  ;;  %v1368_v4 = vstv (!%p115_p2), %s1341_s14 }
   0xd   : > { %s215_s19 = smul.f32 (!%p115_p2), 0.020833334, %s1341_s14 }
   0xe   : > { %s3389_s13 = smov (!%p137_p3, %s1293_s13), 127  ;;  %v1364_v3 = vstv %s181_s18  ;;  %s249_s20 = smul.f32 0.03125, %s1341_s14 }
   0xf   : > { %s1294_s0 = sshll.u32 %s3389_s13, 3  ;;  %v1372_v5 = vstv %s215_s19  ;;  %s283_s21 = smul.f32 0.041666668, %s1341_s14 }
  0x10   : > { %s1351_s17 = scalar_lea.vmem %s3386_s1, %s1294_s0  ;;  %v1380_v7 = vstv %s249_s20  ;;  %s317_s22 = smul.f32 0.052083336, %s1341_s14 }
  0x11   : > { %v1354_v0 = vld [vmem:[%s1351_s17] sm:$0xff]  ;;  %v1358_v1 = vld [vmem:[%s1351_s17 + $0x8] sm:$0xff]  ;;  %v1361_v2 = vld [vmem:[%s1351_s17 + $0x10] sm:$0xff]  ;;  %v1387_v10 = vstv %s283_s21  ;;  %s351_s23 = smul.f32 0.0625, %s1341_s14 }
  0x12   : > { %vm183_vm0 = vcmp.gt.f32.partialorder %v1354_v0, %v1364_v3  ;;  %vm184_vm1 = vcmp.gt.f32.partialorder %v1358_v1, %v1364_v3  ;;  %vm185_vm2 = vcmp.gt.f32.partialorder %v1361_v2, %v1364_v3  ;;  %vm251_vm3 = vcmp.gt.f32.partialorder %v1354_v0, %v1380_v7  ;;  %s385_s24 = smul.f32 0.07291667, %s1341_s14 }
  0x13   : > { %v217_v6 = vsel %vm183_vm0, %v1372_v5, 0.0  ;;  %v218_v8 = vsel %vm184_vm1, %v1372_v5, 0.0  ;;  %v219_v9 = vsel %vm185_vm2, %v1372_v5, 0.0  ;;  %vm252_vm4 = vcmp.gt.f32.partialorder %v1358_v1, %v1380_v7  ;;  %s419_s25 = smul.f32 0.083333336, %s1341_s14 }
  0x14   : > { %vm253_vm5 = vcmp.gt.f32.partialorder %v1361_v2, %v1380_v7  ;;  %v285_v11 = vsel %vm251_vm3, %v1387_v10, %v217_v6  ;;  %v1395_v12 = vstv %s317_s22  ;;  %v286_v13 = vsel %vm252_vm4, %v1387_v10, %v218_v8  ;;  %s453_s26 = smul.f32 0.10416667, %s1341_s14 }
  0x15   : > { %v287_v14 = vsel %vm253_vm5, %v1387_v10, %v219_v9  ;;  %vm319_vm6 = vcmp.gt.f32.partialorder %v1354_v0, %v1395_v12  ;;  %v1402_v15 = vstv %s351_s23  ;;  %vm320_vm7 = vcmp.gt.f32.partialorder %v1358_v1, %v1395_v12  ;;  %s487_s27 = smul.f32 0.125, %s1341_s14 }
  0x16   : > { %vm321_vm8 = vcmp.gt.f32.partialorder %v1361_v2, %v1395_v12  ;;  %v353_v16 = vsel %vm319_vm6, %v1402_v15, %v285_v11  ;;  %v1410_v17 = vstv %s385_s24  ;;  %v354_v18 = vsel %vm320_vm7, %v1402_v15, %v286_v13  ;;  %s521_s28 = smul.f32 0.14583334, %s1341_s14  ;;  %s1581_s24 = scalar_lea.vmem %s3387_s2, %s1294_s0 }
  0x17   : > { %v355_v19 = vsel %vm321_vm8, %v1402_v15, %v287_v14  ;;  %vm387_vm9 = vcmp.gt.f32.partialorder %v1354_v0, %v1410_v17  ;;  %v1417_v20 = vstv %s419_s25  ;;  %vm388_vm10 = vcmp.gt.f32.partialorder %v1358_v1, %v1410_v17  ;;  %s555_s29 = smul.f32 0.16666667, %s1341_s14 }
  0x18   : > { %vm389_vm11 = vcmp.gt.f32.partialorder %v1361_v2, %v1410_v17  ;;  %v421_v21 = vsel %vm387_vm9, %v1417_v20, %v353_v16  ;;  %v1425_v22 = vstv %s453_s26  ;;  %v422_v23 = vsel %vm388_vm10, %v1417_v20, %v354_v18  ;;  %s589_s30 = smul.f32 0.17708334, %s1341_s14  ;;  %v1566_v16 = vld [vmem:[%s1351_s17 + $0x18] sm:$0xff] }
  0x19   : > { %v423_v24 = vsel %vm389_vm11, %v1417_v20, %v355_v19  ;;  %vm455_vm12 = vcmp.gt.f32.partialorder %v1354_v0, %v1425_v22  ;;  %v1432_v25 = vstv %s487_s27  ;;  %vm456_vm13 = vcmp.gt.f32.partialorder %v1358_v1, %v1425_v22  ;;  %s623_s3 = smul.f32 0.1875, %s1341_s14 }
  0x1a   : > { %vm457_vm14 = vcmp.gt.f32.partialorder %v1361_v2, %v1425_v22  ;;  %v489_v26 = vsel %vm455_vm12, %v1432_v25, %v421_v21  ;;  %v1440_v27 = vstv %s521_s28  ;;  %v490_v28 = vsel %vm456_vm13, %v1432_v25, %v422_v23  ;;  %s657_s4 = smul.f32 0.21875, %s1341_s14 }
  0x1b   : > { %v491_v29 = vsel %vm457_vm14, %v1432_v25, %v423_v24  ;;  %vm523_vm15 = vcmp.gt.f32.partialorder %v1354_v0, %v1440_v27  ;;  %v1447_v30 = vstv %s555_s29  ;;  %vm524_vm0 = vcmp.gt.f32.partialorder %v1358_v1, %v1440_v27  ;;  %s691_s5 = smul.f32 0.25, %s1341_s14 }
  0x1c   : > { %vm525_vm1 = vcmp.gt.f32.partialorder %v1361_v2, %v1440_v27  ;;  %v557_v31 = vsel %vm523_vm15, %v1447_v30, %v489_v26  ;;  %v1455_v32 = vstv %s589_s30  ;;  %v558_v33 = vsel %vm524_vm0, %v1447_v30, %v490_v28  ;;  %s725_s6 = smul.f32 0.2916667, %s1341_s14 }
  0x1d   : > { %v559_v34 = vsel %vm525_vm1, %v1447_v30, %v491_v29  ;;  %vm591_vm2 = vcmp.gt.f32.partialorder %v1354_v0, %v1455_v32  ;;  %v1462_v35 = vstv %s623_s3  ;;  %vm592_vm3 = vcmp.gt.f32.partialorder %v1358_v1, %v1455_v32  ;;  %s759_s7 = smul.f32 0.33333334, %s1341_s14 }
  0x1e   : > { %vm593_vm4 = vcmp.gt.f32.partialorder %v1361_v2, %v1455_v32  ;;  %v625_v36 = vsel %vm591_vm2, %v1462_v35, %v557_v31  ;;  %v1470_v37 = vstv %s657_s4  ;;  %v626_v38 = vsel %vm592_vm3, %v1462_v35, %v558_v33  ;;  %s793_s8 = smul.f32 0.3541667, %s1341_s14 }
  0x1f   : > { %v627_v39 = vsel %vm593_vm4, %v1462_v35, %v559_v34  ;;  %vm659_vm5 = vcmp.gt.f32.partialorder %v1354_v0, %v1470_v37  ;;  %v1477_v40 = vstv %s691_s5  ;;  %vm660_vm6 = vcmp.gt.f32.partialorder %v1358_v1, %v1470_v37  ;;  %s827_s9 = smul.f32 0.375, %s1341_s14 }
  0x20   : > { %vm661_vm7 = vcmp.gt.f32.partialorder %v1361_v2, %v1470_v37  ;;  %v693_v41 = vsel %vm659_vm5, %v1477_v40, %v625_v36  ;;  %v1485_v42 = vstv %s725_s6  ;;  %v694_v43 = vsel %vm660_vm6, %v1477_v40, %v626_v38  ;;  %s861_s10 = smul.f32 0.4375, %s1341_s14 }
  0x21   : > { %v695_v44 = vsel %vm661_vm7, %v1477_v40, %v627_v39  ;;  %vm727_vm8 = vcmp.gt.f32.partialorder %v1354_v0, %v1485_v42  ;;  %v1492_v45 = vstv %s759_s7  ;;  %vm728_vm9 = vcmp.gt.f32.partialorder %v1358_v1, %v1485_v42  ;;  %s895_s12 = smul.f32 0.5, %s1341_s14 }
  0x22   : > { %vm729_vm10 = vcmp.gt.f32.partialorder %v1361_v2, %v1485_v42  ;;  %v761_v46 = vsel %vm727_vm8, %v1492_v45, %v693_v41  ;;  %v1500_v47 = vstv %s793_s8  ;;  %v762_v48 = vsel %vm728_vm9, %v1492_v45, %v694_v43  ;;  %s929_s15 = smul.f32 0.5833334, %s1341_s14 }
  0x23   : > { %v763_v49 = vsel %vm729_vm10, %v1492_v45, %v695_v44  ;;  %vm795_vm11 = vcmp.gt.f32.partialorder %v1354_v0, %v1500_v47  ;;  %v1507_v50 = vstv %s827_s9  ;;  %vm796_vm12 = vcmp.gt.f32.partialorder %v1358_v1, %v1500_v47  ;;  %s963_s16 = smul.f32 0.6666667, %s1341_s14 }
  0x24   : > { %vm797_vm13 = vcmp.gt.f32.partialorder %v1361_v2, %v1500_v47  ;;  %v829_v51 = vsel %vm795_vm11, %v1507_v50, %v761_v46  ;;  %v1515_v52 = vstv %s861_s10  ;;  %v830_v53 = vsel %vm796_vm12, %v1507_v50, %v762_v48  ;;  %s997_s18 = smul.f32 0.6770834, %s1341_s14 }
  0x25   : > { %v831_v54 = vsel %vm797_vm13, %v1507_v50, %v763_v49  ;;  %vm863_vm14 = vcmp.gt.f32.partialorder %v1354_v0, %v1515_v52  ;;  %v1522_v55 = vstv %s895_s12  ;;  %vm864_vm15 = vcmp.gt.f32.partialorder %v1358_v1, %v1515_v52  ;;  %s1031_s19 = smul.f32 0.6875, %s1341_s14  ;;  %v1679_v49 = vld [vmem:[%s1351_s17 + $0x28] sm:$0xff] }
  0x26   : > { %vm865_vm0 = vcmp.gt.f32.partialorder %v1361_v2, %v1515_v52  ;;  %v897_v56 = vsel %vm863_vm14, %v1522_v55, %v829_v51  ;;  %v1530_v57 = vstv %s929_s15  ;;  %v898_v58 = vsel %vm864_vm15, %v1522_v55, %v830_v53  ;;  %s1065_s20 = smul.f32 0.71875, %s1341_s14 }
  0x27   : > { %v899_v59 = vsel %vm865_vm0, %v1522_v55, %v831_v54  ;;  %vm931_vm1 = vcmp.gt.f32.partialorder %v1354_v0, %v1530_v57  ;;  %v1537_v60 = vstv %s963_s16  ;;  %vm932_vm2 = vcmp.gt.f32.partialorder %v1358_v1, %v1530_v57  ;;  %s1099_s21 = smul.f32 0.75, %s1341_s14 }
  0x28   : > { %vm933_vm3 = vcmp.gt.f32.partialorder %v1361_v2, %v1530_v57  ;;  %v965_v61 = vsel %vm931_vm1, %v1537_v60, %v897_v56  ;;  %v1545_v62 = vstv %s997_s18  ;;  %v966_v63 = vsel %vm932_vm2, %v1537_v60, %v898_v58  ;;  %s1133_s22 = smul.f32 0.875, %s1341_s14 }
  0x29   : > { %v967_v6 = vsel %vm933_vm3, %v1537_v60, %v899_v59  ;;  %vm999_vm4 = vcmp.gt.f32.partialorder %v1354_v0, %v1545_v62  ;;  %v1552_v8 = vstv %s1031_s19  ;;  %vm1000_vm5 = vcmp.gt.f32.partialorder %v1358_v1, %v1545_v62 }
  0x2a   : > { %vm1001_vm6 = vcmp.gt.f32.partialorder %v1361_v2, %v1545_v62  ;;  %v1033_v9 = vsel %vm999_vm4, %v1552_v8, %v965_v61  ;;  %v1560_v11 = vstv %s1065_s20  ;;  %v1034_v13 = vsel %vm1000_vm5, %v1552_v8, %v966_v63 }
  0x2b   : > { %v1035_v14 = vsel %vm1001_vm6, %v1552_v8, %v967_v6  ;;  %vm1067_vm7 = vcmp.gt.f32.partialorder %v1354_v0, %v1560_v11  ;;  %v1570_v18 = vstv %s1099_s21  ;;  %vm1068_vm8 = vcmp.gt.f32.partialorder %v1358_v1, %v1560_v11 }
  0x2c   : > { %vm1069_vm9 = vcmp.gt.f32.partialorder %v1361_v2, %v1560_v11  ;;  %v1101_v19 = vsel %vm1067_vm7, %v1570_v18, %v1033_v9  ;;  %v1584_v21 = vstv %s1133_s22  ;;  %v1102_v23 = vsel %vm1068_vm8, %v1570_v18, %v1034_v13 }
  0x2d   : > { %v1103_v24 = vsel %vm1069_vm9, %v1570_v18, %v1035_v14  ;;  %vm1135_vm10 = vcmp.gt.f32.partialorder %v1354_v0, %v1584_v21  ;;  %vm1136_vm11 = vcmp.gt.f32.partialorder %v1358_v1, %v1584_v21  ;;  %vm1137_vm12 = vcmp.gt.f32.partialorder %v1361_v2, %v1584_v21  ;;  %v1619_v1 = vld [vmem:[%s1351_s17 + $0x20] sm:$0xff] }
  0x2e   : > { %vm186_vm13 = vcmp.gt.f32.partialorder %v1566_v16, %v1364_v3  ;;  %v1168_v26 = vsel %vm1135_vm10, %v1368_v4, %v1101_v19  ;;  %v1169_v28 = vsel %vm1136_vm11, %v1368_v4, %v1102_v23  ;;  %v1170_v29 = vsel %vm1137_vm12, %v1368_v4, %v1103_v24 }
  0x2f   : > { %v220_v31 = vsel %vm186_vm13, %v1372_v5, 0.0  ;;  %1200 = vst [vmem:[%s1581_s24] sm:$0xff] %v1168_v26  ;;  %1201 = vst [vmem:[%s1581_s24 + $0x8] sm:$0xff] %v1169_v28  ;;  %vm254_vm14 = vcmp.gt.f32.partialorder %v1566_v16, %v1380_v7  ;;  %vm322_vm15 = vcmp.gt.f32.partialorder %v1566_v16, %v1395_v12  ;;  %vm390_vm0 = vcmp.gt.f32.partialorder %v1566_v16, %v1410_v17 }
  0x30   : > { %1202 = vst [vmem:[%s1581_s24 + $0x10] sm:$0xff] %v1170_v29  ;;  %vm458_vm1 = vcmp.gt.f32.partialorder %v1566_v16, %v1425_v22  ;;  %v288_v0 = vsel %vm254_vm14, %v1387_v10, %v220_v31  ;;  %vm526_vm2 = vcmp.gt.f32.partialorder %v1566_v16, %v1440_v27  ;;  %vm594_vm3 = vcmp.gt.f32.partialorder %v1566_v16, %v1455_v32 }
  0x31   : > { %vm662_vm4 = vcmp.gt.f32.partialorder %v1566_v16, %v1470_v37  ;;  %v356_v2 = vsel %vm322_vm15, %v1402_v15, %v288_v0  ;;  %vm730_vm5 = vcmp.gt.f32.partialorder %v1566_v16, %v1485_v42  ;;  %vm798_vm6 = vcmp.gt.f32.partialorder %v1566_v16, %v1500_v47 }
  0x32   : > { %vm866_vm7 = vcmp.gt.f32.partialorder %v1566_v16, %v1515_v52  ;;  %v424_v33 = vsel %vm390_vm0, %v1417_v20, %v356_v2  ;;  %vm934_vm8 = vcmp.gt.f32.partialorder %v1566_v16, %v1530_v57  ;;  %vm1002_vm9 = vcmp.gt.f32.partialorder %v1566_v16, %v1545_v62  ;;  %v1771_v2 = vld [vmem:[%s1351_s17 + $0x30] sm:$0xff] }
  0x33   : > { %vm1070_vm10 = vcmp.gt.f32.partialorder %v1566_v16, %v1560_v11  ;;  %v492_v34 = vsel %vm458_vm1, %v1432_v25, %v424_v33  ;;  %vm1138_vm11 = vcmp.gt.f32.partialorder %v1566_v16, %v1584_v21  ;;  %vm187_vm12 = vcmp.gt.f32.partialorder %v1619_v1, %v1364_v3 }
  0x34   : > { %vm255_vm13 = vcmp.gt.f32.partialorder %v1619_v1, %v1380_v7  ;;  %v560_v36 = vsel %vm526_vm2, %v1447_v30, %v492_v34  ;;  %v221_v38 = vsel %vm187_vm12, %v1372_v5, 0.0  ;;  %vm323_vm14 = vcmp.gt.f32.partialorder %v1619_v1, %v1395_v12 }
  0x35   : > { %vm391_vm15 = vcmp.gt.f32.partialorder %v1619_v1, %v1410_v17  ;;  %v628_v39 = vsel %vm594_vm3, %v1462_v35, %v560_v36  ;;  %v289_v41 = vsel %vm255_vm13, %v1387_v10, %v221_v38  ;;  %vm459_vm0 = vcmp.gt.f32.partialorder %v1619_v1, %v1425_v22 }
  0x36   : > { %vm527_vm1 = vcmp.gt.f32.partialorder %v1619_v1, %v1440_v27  ;;  %v696_v43 = vsel %vm662_vm4, %v1477_v40, %v628_v39  ;;  %v357_v44 = vsel %vm323_vm14, %v1402_v15, %v289_v41  ;;  %vm595_vm2 = vcmp.gt.f32.partialorder %v1619_v1, %v1455_v32 }
  0x37   : > { %vm663_vm3 = vcmp.gt.f32.partialorder %v1619_v1, %v1470_v37  ;;  %v764_v46 = vsel %vm730_vm5, %v1492_v45, %v696_v43  ;;  %v425_v48 = vsel %vm391_vm15, %v1417_v20, %v357_v44  ;;  %vm731_vm12 = vcmp.gt.f32.partialorder %v1619_v1, %v1485_v42 }
  0x38   : > { %vm799_vm4 = vcmp.gt.f32.partialorder %v1619_v1, %v1500_v47  ;;  %v832_v51 = vsel %vm798_vm6, %v1507_v50, %v764_v46  ;;  %v493_v53 = vsel %vm459_vm0, %v1432_v25, %v425_v48  ;;  %vm867_vm5 = vcmp.gt.f32.partialorder %v1619_v1, %v1515_v52 }
  0x39   : > { %vm935_vm13 = vcmp.gt.f32.partialorder %v1619_v1, %v1530_v57  ;;  %v900_v54 = vsel %vm866_vm7, %v1522_v55, %v832_v51  ;;  %v561_v56 = vsel %vm527_vm1, %v1447_v30, %v493_v53  ;;  %vm1003_vm14 = vcmp.gt.f32.partialorder %v1619_v1, %v1545_v62 }
  0x3a   : > { %vm1071_vm6 = vcmp.gt.f32.partialorder %v1619_v1, %v1560_v11  ;;  %v968_v58 = vsel %vm934_vm8, %v1537_v60, %v900_v54  ;;  %v629_v59 = vsel %vm595_vm2, %v1462_v35, %v561_v56  ;;  %vm1139_vm7 = vcmp.gt.f32.partialorder %v1619_v1, %v1584_v21  ;;  %v1822_v54 = vld [vmem:[%s1351_s17 + $0x38] sm:$0xff] }
  0x3b   : > { %vm188_vm15 = vcmp.gt.f32.partialorder %v1679_v49, %v1364_v3  ;;  %v1036_v61 = vsel %vm1002_vm9, %v1552_v8, %v968_v58  ;;  %v697_v63 = vsel %vm663_vm3, %v1477_v40, %v629_v59  ;;  %vm256_vm8 = vcmp.gt.f32.partialorder %v1679_v49, %v1380_v7 }
  0x3c   : > { %v222_v6 = vsel %vm188_vm15, %v1372_v5, 0.0  ;;  %v1104_v9 = vsel %vm1070_vm10, %v1570_v18, %v1036_v61  ;;  %v765_v13 = vsel %vm731_vm12, %v1492_v45, %v697_v63  ;;  %vm324_vm9 = vcmp.gt.f32.partialorder %v1679_v49, %v1395_v12 }
  0x3d   : > { %v290_v14 = vsel %vm256_vm8, %v1387_v10, %v222_v6  ;;  %v1171_v19 = vsel %vm1138_vm11, %v1368_v4, %v1104_v9  ;;  %v833_v23 = vsel %vm799_vm4, %v1507_v50, %v765_v13  ;;  %vm392_vm10 = vcmp.gt.f32.partialorder %v1679_v49, %v1410_v17 }
  0x3e   : > { %v358_v24 = vsel %vm324_vm9, %v1402_v15, %v290_v14  ;;  %1203 = vst [vmem:[%s1581_s24 + $0x18] sm:$0xff] %v1171_v19  ;;  %v901_v26 = vsel %vm867_vm5, %v1522_v55, %v833_v23  ;;  %vm460_vm11 = vcmp.gt.f32.partialorder %v1679_v49, %v1425_v22  ;;  %vm528_vm0 = vcmp.gt.f32.partialorder %v1679_v49, %v1440_v27 }
  0x3f   : > { %v426_v16 = vsel %vm392_vm10, %v1417_v20, %v358_v24  ;;  %v969_v28 = vsel %vm935_vm13, %v1537_v60, %v901_v26  ;;  %vm596_vm1 = vcmp.gt.f32.partialorder %v1679_v49, %v1455_v32  ;;  %vm664_vm2 = vcmp.gt.f32.partialorder %v1679_v49, %v1470_v37  ;;  %v1875_v26 = vld [vmem:[%s1351_s17 + $0x40] sm:$0xff] }
  0x40   : > { %v494_v29 = vsel %vm460_vm11, %v1432_v25, %v426_v16  ;;  %v1037_v31 = vsel %vm1003_vm14, %v1552_v8, %v969_v28  ;;  %vm732_vm3 = vcmp.gt.f32.partialorder %v1679_v49, %v1485_v42  ;;  %vm800_vm12 = vcmp.gt.f32.partialorder %v1679_v49, %v1500_v47 }
  0x41   : > { %v562_v0 = vsel %vm528_vm0, %v1447_v30, %v494_v29  ;;  %v1105_v33 = vsel %vm1071_vm6, %v1570_v18, %v1037_v31  ;;  %vm868_vm4 = vcmp.gt.f32.partialorder %v1679_v49, %v1515_v52  ;;  %vm936_vm5 = vcmp.gt.f32.partialorder %v1679_v49, %v1530_v57 }
  0x42   : > { %v630_v34 = vsel %vm596_vm1, %v1462_v35, %v562_v0  ;;  %v1172_v36 = vsel %vm1139_vm7, %v1368_v4, %v1105_v33  ;;  %vm1004_vm13 = vcmp.gt.f32.partialorder %v1679_v49, %v1545_v62  ;;  %vm189_vm14 = vcmp.gt.f32.partialorder %v1771_v2, %v1364_v3 }
  0x43   : > { %v698_v38 = vsel %vm664_vm2, %v1477_v40, %v630_v34  ;;  %1204 = vst [vmem:[%s1581_s24 + $0x20] sm:$0xff] %v1172_v36  ;;  %vm257_vm6 = vcmp.gt.f32.partialorder %v1771_v2, %v1380_v7  ;;  %v223_v41 = vsel %vm189_vm14, %v1372_v5, 0.0  ;;  %vm325_vm7 = vcmp.gt.f32.partialorder %v1771_v2, %v1395_v12 }
  0x44   : > { %v766_v39 = vsel %vm732_vm3, %v1492_v45, %v698_v38  ;;  %vm393_vm15 = vcmp.gt.f32.partialorder %v1771_v2, %v1410_v17  ;;  %vm1072_vm8 = vcmp.gt.f32.partialorder %v1679_v49, %v1560_v11  ;;  %v291_v44 = vsel %vm257_vm6, %v1387_v10, %v223_v41 }
  0x45   : > { %v834_v1 = vsel %vm800_vm12, %v1507_v50, %v766_v39  ;;  %vm461_vm9 = vcmp.gt.f32.partialorder %v1771_v2, %v1425_v22  ;;  %vm1140_vm10 = vcmp.gt.f32.partialorder %v1679_v49, %v1584_v21  ;;  %v359_v48 = vsel %vm325_vm7, %v1402_v15, %v291_v44 }
  0x46   : > { %v902_v43 = vsel %vm868_vm4, %v1522_v55, %v834_v1  ;;  %vm529_vm11 = vcmp.gt.f32.partialorder %v1771_v2, %v1440_v27  ;;  %v427_v53 = vsel %vm393_vm15, %v1417_v20, %v359_v48  ;;  %vm597_vm0 = vcmp.gt.f32.partialorder %v1771_v2, %v1455_v32 }
  0x47   : > { %v970_v46 = vsel %vm936_vm5, %v1537_v60, %v902_v43  ;;  %vm665_vm1 = vcmp.gt.f32.partialorder %v1771_v2, %v1470_v37  ;;  %v495_v56 = vsel %vm461_vm9, %v1432_v25, %v427_v53  ;;  %vm733_vm2 = vcmp.gt.f32.partialorder %v1771_v2, %v1485_v42 }
  0x48   : > { %v1038_v51 = vsel %vm1004_vm13, %v1552_v8, %v970_v46  ;;  %vm801_vm3 = vcmp.gt.f32.partialorder %v1771_v2, %v1500_v47  ;;  %v563_v59 = vsel %vm529_vm11, %v1447_v30, %v495_v56  ;;  %vm869_vm12 = vcmp.gt.f32.partialorder %v1771_v2, %v1515_v52 }
  0x49   : > { %v1106_v49 = vsel %vm1072_vm8, %v1570_v18, %v1038_v51  ;;  %vm937_vm4 = vcmp.gt.f32.partialorder %v1771_v2, %v1530_v57  ;;  %v631_v61 = vsel %vm597_vm0, %v1462_v35, %v563_v59  ;;  %vm1005_vm5 = vcmp.gt.f32.partialorder %v1771_v2, %v1545_v62  ;;  %v1947_v51 = vld [vmem:[%s1351_s17 + $0x48] sm:$0xff] }
  0x4a   : > { %v1173_v58 = vsel %vm1140_vm10, %v1368_v4, %v1106_v49  ;;  %vm190_vm13 = vcmp.gt.f32.partialorder %v1822_v54, %v1364_v3  ;;  %vm258_vm14 = vcmp.gt.f32.partialorder %v1822_v54, %v1380_v7  ;;  %v699_v63 = vsel %vm665_vm1, %v1477_v40, %v631_v61 }
  0x4b   : > { %1205 = vst [vmem:[%s1581_s24 + $0x28] sm:$0xff] %v1173_v58  ;;  %v224_v6 = vsel %vm190_vm13, %v1372_v5, 0.0  ;;  %vm326_vm6 = vcmp.gt.f32.partialorder %v1822_v54, %v1395_v12  ;;  %vm394_vm7 = vcmp.gt.f32.partialorder %v1822_v54, %v1410_v17  ;;  %v767_v9 = vsel %vm733_vm2, %v1492_v45, %v699_v63 }
  0x4c   : > { %vm1073_vm15 = vcmp.gt.f32.partialorder %v1771_v2, %v1560_v11  ;;  %v292_v13 = vsel %vm258_vm14, %v1387_v10, %v224_v6  ;;  %vm462_vm8 = vcmp.gt.f32.partialorder %v1822_v54, %v1425_v22  ;;  %v835_v14 = vsel %vm801_vm3, %v1507_v50, %v767_v9 }
  0x4d   : > { %vm1141_vm9 = vcmp.gt.f32.partialorder %v1771_v2, %v1584_v21  ;;  %v360_v19 = vsel %vm326_vm6, %v1402_v15, %v292_v13  ;;  %vm530_vm10 = vcmp.gt.f32.partialorder %v1822_v54, %v1440_v27  ;;  %v903_v23 = vsel %vm869_vm12, %v1522_v55, %v835_v14 }
  0x4e   : > { %v428_v24 = vsel %vm394_vm7, %v1417_v20, %v360_v19  ;;  %vm598_vm11 = vcmp.gt.f32.partialorder %v1822_v54, %v1455_v32  ;;  %vm666_vm0 = vcmp.gt.f32.partialorder %v1822_v54, %v1470_v37  ;;  %v971_v16 = vsel %vm937_vm4, %v1537_v60, %v903_v23 }
  0x4f   : > { %v496_v28 = vsel %vm462_vm8, %v1432_v25, %v428_v24  ;;  %vm734_vm1 = vcmp.gt.f32.partialorder %v1822_v54, %v1485_v42  ;;  %vm802_vm2 = vcmp.gt.f32.partialorder %v1822_v54, %v1500_v47  ;;  %v1039_v29 = vsel %vm1005_vm5, %v1552_v8, %v971_v16 }
  0x50   : > { %v564_v31 = vsel %vm530_vm10, %v1447_v30, %v496_v28  ;;  %vm870_vm3 = vcmp.gt.f32.partialorder %v1822_v54, %v1515_v52  ;;  %vm938_vm12 = vcmp.gt.f32.partialorder %v1822_v54, %v1530_v57  ;;  %v1107_v0 = vsel %vm1073_vm15, %v1570_v18, %v1039_v29  ;;  %v2008_v28 = vld [vmem:[%s1351_s17 + $0x50] sm:$0xff] }
  0x51   : > { %v632_v33 = vsel %vm598_vm11, %v1462_v35, %v564_v31  ;;  %vm1006_vm4 = vcmp.gt.f32.partialorder %v1822_v54, %v1545_v62  ;;  %vm191_vm5 = vcmp.gt.f32.partialorder %v1875_v26, %v1364_v3  ;;  %v1174_v34 = vsel %vm1141_vm9, %v1368_v4, %v1107_v0 }
  0x52   : > { %v700_v36 = vsel %vm666_vm0, %v1477_v40, %v632_v33  ;;  %v225_v38 = vsel %vm191_vm5, %v1372_v5, 0.0  ;;  %vm259_vm13 = vcmp.gt.f32.partialorder %v1875_v26, %v1380_v7  ;;  %1206 = vst [vmem:[%s1581_s24 + $0x30] sm:$0xff] %v1174_v34  ;;  %vm327_vm14 = vcmp.gt.f32.partialorder %v1875_v26, %v1395_v12 }
  0x53   : > { %v768_v39 = vsel %vm734_vm1, %v1492_v45, %v700_v36  ;;  %v293_v1 = vsel %vm259_vm13, %v1387_v10, %v225_v38  ;;  %vm395_vm6 = vcmp.gt.f32.partialorder %v1875_v26, %v1410_v17  ;;  %vm463_vm7 = vcmp.gt.f32.partialorder %v1875_v26, %v1425_v22 }
  0x54   : > { %v836_v2 = vsel %vm802_vm2, %v1507_v50, %v768_v39  ;;  %v361_v41 = vsel %vm327_vm14, %v1402_v15, %v293_v1  ;;  %vm531_vm15 = vcmp.gt.f32.partialorder %v1875_v26, %v1440_v27  ;;  %vm1074_vm8 = vcmp.gt.f32.partialorder %v1822_v54, %v1560_v11 }
  0x55   : > { %v904_v43 = vsel %vm870_vm3, %v1522_v55, %v836_v2  ;;  %v429_v44 = vsel %vm395_vm6, %v1417_v20, %v361_v41  ;;  %vm599_vm9 = vcmp.gt.f32.partialorder %v1875_v26, %v1455_v32  ;;  %vm1142_vm10 = vcmp.gt.f32.partialorder %v1822_v54, %v1584_v21 }
  0x56   : > { %v972_v46 = vsel %vm938_vm12, %v1537_v60, %v904_v43  ;;  %v497_v48 = vsel %vm463_vm7, %v1432_v25, %v429_v44  ;;  %vm667_vm11 = vcmp.gt.f32.partialorder %v1875_v26, %v1470_v37  ;;  %vm735_vm0 = vcmp.gt.f32.partialorder %v1875_v26, %v1485_v42  ;;  %v2061_v44 = vld [vmem:[%s1351_s17 + $0x58] sm:$0xff] }
  0x57   : > { %v1040_v53 = vsel %vm1006_vm4, %v1552_v8, %v972_v46  ;;  %v565_v49 = vsel %vm531_vm15, %v1447_v30, %v497_v48  ;;  %vm803_vm1 = vcmp.gt.f32.partialorder %v1875_v26, %v1500_v47  ;;  %vm871_vm2 = vcmp.gt.f32.partialorder %v1875_v26, %v1515_v52 }
  0x58   : > { %v1108_v56 = vsel %vm1074_vm8, %v1570_v18, %v1040_v53  ;;  %v633_v58 = vsel %vm599_vm9, %v1462_v35, %v565_v49  ;;  %vm939_vm3 = vcmp.gt.f32.partialorder %v1875_v26, %v1530_v57  ;;  %vm1007_vm12 = vcmp.gt.f32.partialorder %v1875_v26, %v1545_v62 }
  0x59   : > { %v1175_v54 = vsel %vm1142_vm10, %v1368_v4, %v1108_v56  ;;  %v701_v59 = vsel %vm667_vm11, %v1477_v40, %v633_v58  ;;  %vm192_vm4 = vcmp.gt.f32.partialorder %v1947_v51, %v1364_v3  ;;  %vm260_vm5 = vcmp.gt.f32.partialorder %v1947_v51, %v1380_v7 }
  0x5a   : > { %1207 = vst [vmem:[%s1581_s24 + $0x38] sm:$0xff] %v1175_v54  ;;  %v769_v61 = vsel %vm735_vm0, %v1492_v45, %v701_v59  ;;  %v226_v63 = vsel %vm192_vm4, %v1372_v5, 0.0  ;;  %vm328_vm13 = vcmp.gt.f32.partialorder %v1947_v51, %v1395_v12  ;;  %vm396_vm14 = vcmp.gt.f32.partialorder %v1947_v51, %v1410_v17 }
  0x5b   : > { %v837_v6 = vsel %vm803_vm1, %v1507_v50, %v769_v61  ;;  %v294_v9 = vsel %vm260_vm5, %v1387_v10, %v226_v63  ;;  %vm464_vm6 = vcmp.gt.f32.partialorder %v1947_v51, %v1425_v22  ;;  %vm1075_vm7 = vcmp.gt.f32.partialorder %v1875_v26, %v1560_v11 }
  0x5c   : > { %v905_v13 = vsel %vm871_vm2, %v1522_v55, %v837_v6  ;;  %v362_v14 = vsel %vm328_vm13, %v1402_v15, %v294_v9  ;;  %vm532_vm15 = vcmp.gt.f32.partialorder %v1947_v51, %v1440_v27  ;;  %vm1143_vm8 = vcmp.gt.f32.partialorder %v1875_v26, %v1584_v21 }
  0x5d   : > { %v973_v19 = vsel %vm939_vm3, %v1537_v60, %v905_v13  ;;  %v430_v23 = vsel %vm396_vm14, %v1417_v20, %v362_v14  ;;  %vm600_vm9 = vcmp.gt.f32.partialorder %v1947_v51, %v1455_v32  ;;  %vm668_vm10 = vcmp.gt.f32.partialorder %v1947_v51, %v1470_v37  ;;  %v2128_v14 = vld [vmem:[%s1351_s17 + $0x60] sm:$0xff] }
  0x5e   : > { %v1041_v24 = vsel %vm1007_vm12, %v1552_v8, %v973_v19  ;;  %v498_v16 = vsel %vm464_vm6, %v1432_v25, %v430_v23  ;;  %vm736_vm11 = vcmp.gt.f32.partialorder %v1947_v51, %v1485_v42  ;;  %vm804_vm0 = vcmp.gt.f32.partialorder %v1947_v51, %v1500_v47 }
  0x5f   : > { %v1109_v29 = vsel %vm1075_vm7, %v1570_v18, %v1041_v24  ;;  %v566_v31 = vsel %vm532_vm15, %v1447_v30, %v498_v16  ;;  %vm872_vm1 = vcmp.gt.f32.partialorder %v1947_v51, %v1515_v52  ;;  %vm940_vm2 = vcmp.gt.f32.partialorder %v1947_v51, %v1530_v57 }
  0x60   : > { %v1176_v26 = vsel %vm1143_vm8, %v1368_v4, %v1109_v29  ;;  %v634_v0 = vsel %vm600_vm9, %v1462_v35, %v566_v31  ;;  %vm1008_vm3 = vcmp.gt.f32.partialorder %v1947_v51, %v1545_v62  ;;  %vm193_vm12 = vcmp.gt.f32.partialorder %v2008_v28, %v1364_v3 }
  0x61   : > { %1208 = vst [vmem:[%s1581_s24 + $0x40] sm:$0xff] %v1176_v26  ;;  %v702_v33 = vsel %vm668_vm10, %v1477_v40, %v634_v0  ;;  %vm261_vm4 = vcmp.gt.f32.partialorder %v2008_v28, %v1380_v7  ;;  %vm329_vm5 = vcmp.gt.f32.partialorder %v2008_v28, %v1395_v12  ;;  %vm1076_vm13 = vcmp.gt.f32.partialorder %v1947_v51, %v1560_v11 }
  0x62   : > { %v770_v34 = vsel %vm736_vm11, %v1492_v45, %v702_v33  ;;  %v227_v36 = vsel %vm193_vm12, %v1372_v5, 0.0  ;;  %vm397_vm14 = vcmp.gt.f32.partialorder %v2008_v28, %v1410_v17  ;;  %vm1144_vm6 = vcmp.gt.f32.partialorder %v1947_v51, %v1584_v21 }
  0x63   : > { %v838_v38 = vsel %vm804_vm0, %v1507_v50, %v770_v34  ;;  %v295_v39 = vsel %vm261_vm4, %v1387_v10, %v227_v36  ;;  %vm465_vm7 = vcmp.gt.f32.partialorder %v2008_v28, %v1425_v22  ;;  %vm533_vm15 = vcmp.gt.f32.partialorder %v2008_v28, %v1440_v27 }
  0x64   : > { %v906_v1 = vsel %vm872_vm1, %v1522_v55, %v838_v38  ;;  %v363_v2 = vsel %vm329_vm5, %v1402_v15, %v295_v39  ;;  %vm601_vm8 = vcmp.gt.f32.partialorder %v2008_v28, %v1455_v32  ;;  %vm669_vm9 = vcmp.gt.f32.partialorder %v2008_v28, %v1470_v37 }
  0x65   : > { %v974_v41 = vsel %vm940_vm2, %v1537_v60, %v906_v1  ;;  %v431_v43 = vsel %vm397_vm14, %v1417_v20, %v363_v2  ;;  %vm737_vm10 = vcmp.gt.f32.partialorder %v2008_v28, %v1485_v42  ;;  %vm805_vm11 = vcmp.gt.f32.partialorder %v2008_v28, %v1500_v47 }
  0x66   : > { %v1042_v46 = vsel %vm1008_vm3, %v1552_v8, %v974_v41  ;;  %v499_v48 = vsel %vm465_vm7, %v1432_v25, %v431_v43  ;;  %vm873_vm0 = vcmp.gt.f32.partialorder %v2008_v28, %v1515_v52  ;;  %vm941_vm1 = vcmp.gt.f32.partialorder %v2008_v28, %v1530_v57  ;;  %v2200_v43 = vld [vmem:[%s1351_s17 + $0x68] sm:$0xff] }
  0x67   : > { %v1110_v53 = vsel %vm1076_vm13, %v1570_v18, %v1042_v46  ;;  %v567_v49 = vsel %vm533_vm15, %v1447_v30, %v499_v48  ;;  %vm1009_vm2 = vcmp.gt.f32.partialorder %v2008_v28, %v1545_v62  ;;  %vm194_vm3 = vcmp.gt.f32.partialorder %v2061_v44, %v1364_v3 }
  0x68   : > { %v1177_v56 = vsel %vm1144_vm6, %v1368_v4, %v1110_v53  ;;  %v635_v58 = vsel %vm601_vm8, %v1462_v35, %v567_v49  ;;  %vm262_vm12 = vcmp.gt.f32.partialorder %v2061_v44, %v1380_v7  ;;  %v228_v59 = vsel %vm194_vm3, %v1372_v5, 0.0 }
  0x69   : > { %1209 = vst [vmem:[%s1581_s24 + $0x48] sm:$0xff] %v1177_v56  ;;  %v703_v54 = vsel %vm669_vm9, %v1477_v40, %v635_v58  ;;  %vm330_vm4 = vcmp.gt.f32.partialorder %v2061_v44, %v1395_v12  ;;  %vm398_vm5 = vcmp.gt.f32.partialorder %v2061_v44, %v1410_v17  ;;  %vm1077_vm13 = vcmp.gt.f32.partialorder %v2008_v28, %v1560_v11 }
  0x6a   : > { %v771_v51 = vsel %vm737_vm10, %v1492_v45, %v703_v54  ;;  %v296_v61 = vsel %vm262_vm12, %v1387_v10, %v228_v59  ;;  %vm466_vm14 = vcmp.gt.f32.partialorder %v2061_v44, %v1425_v22  ;;  %vm1145_vm6 = vcmp.gt.f32.partialorder %v2008_v28, %v1584_v21 }
  0x6b   : > { %v839_v63 = vsel %vm805_vm11, %v1507_v50, %v771_v51  ;;  %v364_v6 = vsel %vm330_vm4, %v1402_v15, %v296_v61  ;;  %vm534_vm7 = vcmp.gt.f32.partialorder %v2061_v44, %v1440_v27  ;;  %vm602_vm15 = vcmp.gt.f32.partialorder %v2061_v44, %v1455_v32 }
  0x6c   : > { %v907_v9 = vsel %vm873_vm0, %v1522_v55, %v839_v63  ;;  %v432_v13 = vsel %vm398_vm5, %v1417_v20, %v364_v6  ;;  %vm670_vm8 = vcmp.gt.f32.partialorder %v2061_v44, %v1470_v37  ;;  %vm738_vm9 = vcmp.gt.f32.partialorder %v2061_v44, %v1485_v42 }
  0x6d   : > { %v975_v19 = vsel %vm941_vm1, %v1537_v60, %v907_v9  ;;  %v500_v23 = vsel %vm466_vm14, %v1432_v25, %v432_v13  ;;  %vm806_vm10 = vcmp.gt.f32.partialorder %v2061_v44, %v1500_v47  ;;  %vm874_vm11 = vcmp.gt.f32.partialorder %v2061_v44, %v1515_v52 }
  0x6e   : > { %v1043_v24 = vsel %vm1009_vm2, %v1552_v8, %v975_v19  ;;  %v568_v16 = vsel %vm534_vm7, %v1447_v30, %v500_v23  ;;  %vm942_vm0 = vcmp.gt.f32.partialorder %v2061_v44, %v1530_v57  ;;  %vm1010_vm1 = vcmp.gt.f32.partialorder %v2061_v44, %v1545_v62  ;;  %v2261_v23 = vld [vmem:[%s1351_s17 + $0x70] sm:$0xff] }
  0x6f   : > { %v1111_v29 = vsel %vm1077_vm13, %v1570_v18, %v1043_v24  ;;  %v636_v31 = vsel %vm602_vm15, %v1462_v35, %v568_v16  ;;  %vm195_vm2 = vcmp.gt.f32.partialorder %v2128_v14, %v1364_v3  ;;  %vm263_vm3 = vcmp.gt.f32.partialorder %v2128_v14, %v1380_v7 }
  0x70   : > { %v1178_v26 = vsel %vm1145_vm6, %v1368_v4, %v1111_v29  ;;  %v704_v0 = vsel %vm670_vm8, %v1477_v40, %v636_v31  ;;  %v229_v33 = vsel %vm195_vm2, %v1372_v5, 0.0  ;;  %vm331_vm12 = vcmp.gt.f32.partialorder %v2128_v14, %v1395_v12 }
  0x71   : > { %1210 = vst [vmem:[%s1581_s24 + $0x50] sm:$0xff] %v1178_v26  ;;  %v772_v34 = vsel %vm738_vm9, %v1492_v45, %v704_v0  ;;  %v297_v36 = vsel %vm263_vm3, %v1387_v10, %v229_v33  ;;  %vm399_vm4 = vcmp.gt.f32.partialorder %v2128_v14, %v1410_v17  ;;  %vm467_vm5 = vcmp.gt.f32.partialorder %v2128_v14, %v1425_v22 }
  0x72   : > { %v840_v28 = vsel %vm806_vm10, %v1507_v50, %v772_v34  ;;  %v365_v38 = vsel %vm331_vm12, %v1402_v15, %v297_v36  ;;  %vm535_vm13 = vcmp.gt.f32.partialorder %v2128_v14, %v1440_v27  ;;  %vm1078_vm14 = vcmp.gt.f32.partialorder %v2061_v44, %v1560_v11 }
  0x73   : > { %v908_v39 = vsel %vm874_vm11, %v1522_v55, %v840_v28  ;;  %v433_v1 = vsel %vm399_vm4, %v1417_v20, %v365_v38  ;;  %vm603_vm6 = vcmp.gt.f32.partialorder %v2128_v14, %v1455_v32  ;;  %vm1146_vm7 = vcmp.gt.f32.partialorder %v2061_v44, %v1584_v21 }
  0x74   : > { %v976_v2 = vsel %vm942_vm0, %v1537_v60, %v908_v39  ;;  %v501_v41 = vsel %vm467_vm5, %v1432_v25, %v433_v1  ;;  %vm671_vm15 = vcmp.gt.f32.partialorder %v2128_v14, %v1470_v37  ;;  %vm739_vm8 = vcmp.gt.f32.partialorder %v2128_v14, %v1485_v42  ;;  %v2314_v1 = vld [vmem:[%s1351_s17 + $0x78] sm:$0xff] }
  0x75   : > { %v1044_v46 = vsel %vm1010_vm1, %v1552_v8, %v976_v2  ;;  %v569_v48 = vsel %vm535_vm13, %v1447_v30, %v501_v41  ;;  %vm807_vm9 = vcmp.gt.f32.partialorder %v2128_v14, %v1500_v47  ;;  %vm875_vm10 = vcmp.gt.f32.partialorder %v2128_v14, %v1515_v52 }
  0x76   : > { %v1112_v53 = vsel %vm1078_vm14, %v1570_v18, %v1044_v46  ;;  %v637_v49 = vsel %vm603_vm6, %v1462_v35, %v569_v48  ;;  %vm943_vm11 = vcmp.gt.f32.partialorder %v2128_v14, %v1530_v57  ;;  %vm1011_vm0 = vcmp.gt.f32.partialorder %v2128_v14, %v1545_v62 }
  0x77   : > { %v1179_v44 = vsel %vm1146_vm7, %v1368_v4, %v1112_v53  ;;  %v705_v56 = vsel %vm671_vm15, %v1477_v40, %v637_v49  ;;  %vm196_vm1 = vcmp.gt.f32.partialorder %v2200_v43, %v1364_v3  ;;  %vm264_vm2 = vcmp.gt.f32.partialorder %v2200_v43, %v1380_v7 }
  0x78   : > { %1211 = vst [vmem:[%s1581_s24 + $0x58] sm:$0xff] %v1179_v44  ;;  %v773_v58 = vsel %vm739_vm8, %v1492_v45, %v705_v56  ;;  %v230_v54 = vsel %vm196_vm1, %v1372_v5, 0.0  ;;  %vm332_vm3 = vcmp.gt.f32.partialorder %v2200_v43, %v1395_v12  ;;  %vm400_vm12 = vcmp.gt.f32.partialorder %v2200_v43, %v1410_v17 }
  0x79   : > { %v841_v59 = vsel %vm807_vm9, %v1507_v50, %v773_v58  ;;  %v298_v51 = vsel %vm264_vm2, %v1387_v10, %v230_v54  ;;  %vm468_vm4 = vcmp.gt.f32.partialorder %v2200_v43, %v1425_v22  ;;  %vm1079_vm5 = vcmp.gt.f32.partialorder %v2128_v14, %v1560_v11 }
  0x7a   : > { %v909_v61 = vsel %vm875_vm10, %v1522_v55, %v841_v59  ;;  %v366_v63 = vsel %vm332_vm3, %v1402_v15, %v298_v51  ;;  %vm536_vm13 = vcmp.gt.f32.partialorder %v2200_v43, %v1440_v27  ;;  %vm1147_vm14 = vcmp.gt.f32.partialorder %v2128_v14, %v1584_v21 }
  0x7b   : > { %v977_v6 = vsel %vm943_vm11, %v1537_v60, %v909_v61  ;;  %v434_v9 = vsel %vm400_vm12, %v1417_v20, %v366_v63  ;;  %vm604_vm6 = vcmp.gt.f32.partialorder %v2200_v43, %v1455_v32  ;;  %vm672_vm7 = vcmp.gt.f32.partialorder %v2200_v43, %v1470_v37  ;;  %v2381_v63 = vld [vmem:[%s1351_s17 + $0x80] sm:$0xff] }
  0x7c   : > { %v1045_v13 = vsel %vm1011_vm0, %v1552_v8, %v977_v6  ;;  %v502_v19 = vsel %vm468_vm4, %v1432_v25, %v434_v9  ;;  %vm740_vm15 = vcmp.gt.f32.partialorder %v2200_v43, %v1485_v42  ;;  %vm808_vm8 = vcmp.gt.f32.partialorder %v2200_v43, %v1500_v47 }
  0x7d   : > { %v1113_v24 = vsel %vm1079_vm5, %v1570_v18, %v1045_v13  ;;  %v570_v16 = vsel %vm536_vm13, %v1447_v30, %v502_v19  ;;  %vm876_vm9 = vcmp.gt.f32.partialorder %v2200_v43, %v1515_v52  ;;  %vm944_vm10 = vcmp.gt.f32.partialorder %v2200_v43, %v1530_v57 }
  0x7e   : > { %v1180_v14 = vsel %vm1147_vm14, %v1368_v4, %v1113_v24  ;;  %v638_v29 = vsel %vm604_vm6, %v1462_v35, %v570_v16  ;;  %vm1012_vm11 = vcmp.gt.f32.partialorder %v2200_v43, %v1545_v62  ;;  %vm197_vm0 = vcmp.gt.f32.partialorder %v2261_v23, %v1364_v3 }
  0x7f   : > { %1212 = vst [vmem:[%s1581_s24 + $0x60] sm:$0xff] %v1180_v14  ;;  %v706_v31 = vsel %vm672_vm7, %v1477_v40, %v638_v29  ;;  %vm265_vm1 = vcmp.gt.f32.partialorder %v2261_v23, %v1380_v7  ;;  %vm333_vm2 = vcmp.gt.f32.partialorder %v2261_v23, %v1395_v12  ;;  %vm1080_vm3 = vcmp.gt.f32.partialorder %v2200_v43, %v1560_v11 }
  0x80   : > { %v774_v26 = vsel %vm740_vm15, %v1492_v45, %v706_v31  ;;  %v231_v0 = vsel %vm197_vm0, %v1372_v5, 0.0  ;;  %vm401_vm12 = vcmp.gt.f32.partialorder %v2261_v23, %v1410_v17  ;;  %vm1148_vm4 = vcmp.gt.f32.partialorder %v2200_v43, %v1584_v21 }
  0x81   : > { %v842_v33 = vsel %vm808_vm8, %v1507_v50, %v774_v26  ;;  %v299_v34 = vsel %vm265_vm1, %v1387_v10, %v231_v0  ;;  %vm469_vm5 = vcmp.gt.f32.partialorder %v2261_v23, %v1425_v22  ;;  %vm537_vm13 = vcmp.gt.f32.partialorder %v2261_v23, %v1440_v27 }
  0x82   : > { %v910_v36 = vsel %vm876_vm9, %v1522_v55, %v842_v33  ;;  %v367_v28 = vsel %vm333_vm2, %v1402_v15, %v299_v34  ;;  %vm605_vm14 = vcmp.gt.f32.partialorder %v2261_v23, %v1455_v32  ;;  %vm673_vm6 = vcmp.gt.f32.partialorder %v2261_v23, %v1470_v37 }
  0x83   : > { %v978_v38 = vsel %vm944_vm10, %v1537_v60, %v910_v36  ;;  %v435_v39 = vsel %vm401_vm12, %v1417_v20, %v367_v28  ;;  %vm741_vm7 = vcmp.gt.f32.partialorder %v2261_v23, %v1485_v42  ;;  %vm809_vm15 = vcmp.gt.f32.partialorder %v2261_v23, %v1500_v47 }
  0x84   : > { %v1046_v2 = vsel %vm1012_vm11, %v1552_v8, %v978_v38  ;;  %v503_v41 = vsel %vm469_vm5, %v1432_v25, %v435_v39  ;;  %vm877_vm8 = vcmp.gt.f32.partialorder %v2261_v23, %v1515_v52  ;;  %vm945_vm9 = vcmp.gt.f32.partialorder %v2261_v23, %v1530_v57  ;;  %v2453_v39 = vld [vmem:[%s1351_s17 + $0x88] sm:$0xff] }
  0x85   : > { %v1114_v46 = vsel %vm1080_vm3, %v1570_v18, %v1046_v2  ;;  %v571_v48 = vsel %vm537_vm13, %v1447_v30, %v503_v41  ;;  %vm1013_vm10 = vcmp.gt.f32.partialorder %v2261_v23, %v1545_v62  ;;  %vm198_vm11 = vcmp.gt.f32.partialorder %v2314_v1, %v1364_v3 }
  0x86   : > { %v1181_v53 = vsel %vm1148_vm4, %v1368_v4, %v1114_v46  ;;  %v639_v49 = vsel %vm605_vm14, %v1462_v35, %v571_v48  ;;  %vm266_vm0 = vcmp.gt.f32.partialorder %v2314_v1, %v1380_v7  ;;  %v232_v56 = vsel %vm198_vm11, %v1372_v5, 0.0 }
  0x87   : > { %1213 = vst [vmem:[%s1581_s24 + $0x68] sm:$0xff] %v1181_v53  ;;  %v707_v44 = vsel %vm673_vm6, %v1477_v40, %v639_v49  ;;  %vm334_vm1 = vcmp.gt.f32.partialorder %v2314_v1, %v1395_v12  ;;  %vm402_vm2 = vcmp.gt.f32.partialorder %v2314_v1, %v1410_v17  ;;  %vm1081_vm3 = vcmp.gt.f32.partialorder %v2261_v23, %v1560_v11 }
  0x88   : > { %v775_v43 = vsel %vm741_vm7, %v1492_v45, %v707_v44  ;;  %v300_v58 = vsel %vm266_vm0, %v1387_v10, %v232_v56  ;;  %vm470_vm12 = vcmp.gt.f32.partialorder %v2314_v1, %v1425_v22  ;;  %vm1149_vm4 = vcmp.gt.f32.partialorder %v2261_v23, %v1584_v21 }
  0x89   : > { %v843_v54 = vsel %vm809_vm15, %v1507_v50, %v775_v43  ;;  %v368_v59 = vsel %vm334_vm1, %v1402_v15, %v300_v58  ;;  %vm538_vm5 = vcmp.gt.f32.partialorder %v2314_v1, %v1440_v27  ;;  %vm606_vm13 = vcmp.gt.f32.partialorder %v2314_v1, %v1455_v32 }
  0x8a   : > { %v911_v51 = vsel %vm877_vm8, %v1522_v55, %v843_v54  ;;  %v436_v61 = vsel %vm402_vm2, %v1417_v20, %v368_v59  ;;  %vm674_vm14 = vcmp.gt.f32.partialorder %v2314_v1, %v1470_v37  ;;  %vm742_vm6 = vcmp.gt.f32.partialorder %v2314_v1, %v1485_v42 }
  0x8b   : > { %v979_v6 = vsel %vm945_vm9, %v1537_v60, %v911_v51  ;;  %v504_v9 = vsel %vm470_vm12, %v1432_v25, %v436_v61  ;;  %vm810_vm7 = vcmp.gt.f32.partialorder %v2314_v1, %v1500_v47  ;;  %vm878_vm15 = vcmp.gt.f32.partialorder %v2314_v1, %v1515_v52 }
  0x8c   : > { %v1047_v13 = vsel %vm1013_vm10, %v1552_v8, %v979_v6  ;;  %v572_v19 = vsel %vm538_vm5, %v1447_v30, %v504_v9  ;;  %vm946_vm8 = vcmp.gt.f32.partialorder %v2314_v1, %v1530_v57  ;;  %vm1014_vm9 = vcmp.gt.f32.partialorder %v2314_v1, %v1545_v62  ;;  %v2514_v9 = vld [vmem:[%s1351_s17 + $0x90] sm:$0xff] }
  0x8d   : > { %v1115_v24 = vsel %vm1081_vm3, %v1570_v18, %v1047_v13  ;;  %v640_v16 = vsel %vm606_vm13, %v1462_v35, %v572_v19  ;;  %vm199_vm10 = vcmp.gt.f32.partialorder %v2381_v63, %v1364_v3  ;;  %vm267_vm11 = vcmp.gt.f32.partialorder %v2381_v63, %v1380_v7 }
  0x8e   : > { %v1182_v14 = vsel %vm1149_vm4, %v1368_v4, %v1115_v24  ;;  %v708_v29 = vsel %vm674_vm14, %v1477_v40, %v640_v16  ;;  %v233_v31 = vsel %vm199_vm10, %v1372_v5, 0.0  ;;  %vm335_vm0 = vcmp.gt.f32.partialorder %v2381_v63, %v1395_v12 }
  0x8f   : > { %1214 = vst [vmem:[%s1581_s24 + $0x70] sm:$0xff] %v1182_v14  ;;  %v776_v26 = vsel %vm742_vm6, %v1492_v45, %v708_v29  ;;  %v301_v0 = vsel %vm267_vm11, %v1387_v10, %v233_v31  ;;  %vm403_vm1 = vcmp.gt.f32.partialorder %v2381_v63, %v1410_v17  ;;  %vm471_vm2 = vcmp.gt.f32.partialorder %v2381_v63, %v1425_v22 }
  0x90   : > { %v844_v23 = vsel %vm810_vm7, %v1507_v50, %v776_v26  ;;  %v369_v33 = vsel %vm335_vm0, %v1402_v15, %v301_v0  ;;  %vm539_vm3 = vcmp.gt.f32.partialorder %v2381_v63, %v1440_v27  ;;  %vm1082_vm12 = vcmp.gt.f32.partialorder %v2314_v1, %v1560_v11 }
  0x91   : > { %v912_v34 = vsel %vm878_vm15, %v1522_v55, %v844_v23  ;;  %v437_v36 = vsel %vm403_vm1, %v1417_v20, %v369_v33  ;;  %vm607_vm4 = vcmp.gt.f32.partialorder %v2381_v63, %v1455_v32  ;;  %vm1150_vm5 = vcmp.gt.f32.partialorder %v2314_v1, %v1584_v21 }
  0x92   : > { %v980_v28 = vsel %vm946_vm8, %v1537_v60, %v912_v34  ;;  %v505_v38 = vsel %vm471_vm2, %v1432_v25, %v437_v36  ;;  %vm675_vm13 = vcmp.gt.f32.partialorder %v2381_v63, %v1470_v37  ;;  %vm743_vm14 = vcmp.gt.f32.partialorder %v2381_v63, %v1485_v42  ;;  %v2567_v36 = vld [vmem:[%s1351_s17 + $0x98] sm:$0xff] }
  0x93   : > { %v1048_v2 = vsel %vm1014_vm9, %v1552_v8, %v980_v28  ;;  %v573_v41 = vsel %vm539_vm3, %v1447_v30, %v505_v38  ;;  %vm811_vm6 = vcmp.gt.f32.partialorder %v2381_v63, %v1500_v47  ;;  %vm879_vm7 = vcmp.gt.f32.partialorder %v2381_v63, %v1515_v52 }
  0x94   : > { %v1116_v46 = vsel %vm1082_vm12, %v1570_v18, %v1048_v2  ;;  %v641_v48 = vsel %vm607_vm4, %v1462_v35, %v573_v41  ;;  %vm947_vm15 = vcmp.gt.f32.partialorder %v2381_v63, %v1530_v57  ;;  %vm1015_vm8 = vcmp.gt.f32.partialorder %v2381_v63, %v1545_v62 }
  0x95   : > { %v1183_v1 = vsel %vm1150_vm5, %v1368_v4, %v1116_v46  ;;  %v709_v53 = vsel %vm675_vm13, %v1477_v40, %v641_v48  ;;  %vm200_vm9 = vcmp.gt.f32.partialorder %v2453_v39, %v1364_v3  ;;  %vm268_vm10 = vcmp.gt.f32.partialorder %v2453_v39, %v1380_v7 }
  0x96   : > { %1215 = vst [vmem:[%s1581_s24 + $0x78] sm:$0xff] %v1183_v1  ;;  %v777_v49 = vsel %vm743_vm14, %v1492_v45, %v709_v53  ;;  %v234_v44 = vsel %vm200_vm9, %v1372_v5, 0.0  ;;  %vm336_vm11 = vcmp.gt.f32.partialorder %v2453_v39, %v1395_v12  ;;  %vm404_vm0 = vcmp.gt.f32.partialorder %v2453_v39, %v1410_v17 }
  0x97   : > { %v845_v56 = vsel %vm811_vm6, %v1507_v50, %v777_v49  ;;  %v302_v43 = vsel %vm268_vm10, %v1387_v10, %v234_v44  ;;  %vm472_vm1 = vcmp.gt.f32.partialorder %v2453_v39, %v1425_v22  ;;  %vm1083_vm2 = vcmp.gt.f32.partialorder %v2381_v63, %v1560_v11 }
  0x98   : > { %v913_v58 = vsel %vm879_vm7, %v1522_v55, %v845_v56  ;;  %v370_v54 = vsel %vm336_vm11, %v1402_v15, %v302_v43  ;;  %vm540_vm3 = vcmp.gt.f32.partialorder %v2453_v39, %v1440_v27  ;;  %vm1151_vm12 = vcmp.gt.f32.partialorder %v2381_v63, %v1584_v21 }
  0x99   : > { %v981_v59 = vsel %vm947_vm15, %v1537_v60, %v913_v58  ;;  %v438_v51 = vsel %vm404_vm0, %v1417_v20, %v370_v54  ;;  %vm608_vm4 = vcmp.gt.f32.partialorder %v2453_v39, %v1455_v32  ;;  %vm676_vm5 = vcmp.gt.f32.partialorder %v2453_v39, %v1470_v37  ;;  %v2634_v54 = vld [vmem:[%s1351_s17 + $0xa0] sm:$0xff] }
  0x9a   : > { %v1049_v61 = vsel %vm1015_vm8, %v1552_v8, %v981_v59  ;;  %v506_v6 = vsel %vm472_vm1, %v1432_v25, %v438_v51  ;;  %vm744_vm13 = vcmp.gt.f32.partialorder %v2453_v39, %v1485_v42  ;;  %vm812_vm14 = vcmp.gt.f32.partialorder %v2453_v39, %v1500_v47 }
  0x9b   : > { %v1117_v13 = vsel %vm1083_vm2, %v1570_v18, %v1049_v61  ;;  %v574_v19 = vsel %vm540_vm3, %v1447_v30, %v506_v6  ;;  %vm880_vm6 = vcmp.gt.f32.partialorder %v2453_v39, %v1515_v52  ;;  %vm948_vm7 = vcmp.gt.f32.partialorder %v2453_v39, %v1530_v57 }
  0x9c   : > { %v1184_v63 = vsel %vm1151_vm12, %v1368_v4, %v1117_v13  ;;  %v642_v24 = vsel %vm608_vm4, %v1462_v35, %v574_v19  ;;  %vm1016_vm15 = vcmp.gt.f32.partialorder %v2453_v39, %v1545_v62  ;;  %vm201_vm8 = vcmp.gt.f32.partialorder %v2514_v9, %v1364_v3 }
  0x9d   : > { %1216 = vst [vmem:[%s1581_s24 + $0x80] sm:$0xff] %v1184_v63  ;;  %v710_v16 = vsel %vm676_vm5, %v1477_v40, %v642_v24  ;;  %vm269_vm9 = vcmp.gt.f32.partialorder %v2514_v9, %v1380_v7  ;;  %vm337_vm10 = vcmp.gt.f32.partialorder %v2514_v9, %v1395_v12  ;;  %vm1084_vm11 = vcmp.gt.f32.partialorder %v2453_v39, %v1560_v11 }
  0x9e   : > { %v778_v14 = vsel %vm744_vm13, %v1492_v45, %v710_v16  ;;  %v235_v29 = vsel %vm201_vm8, %v1372_v5, 0.0  ;;  %vm405_vm0 = vcmp.gt.f32.partialorder %v2514_v9, %v1410_v17  ;;  %vm1152_vm1 = vcmp.gt.f32.partialorder %v2453_v39, %v1584_v21 }
  0x9f   : > { %v846_v31 = vsel %vm812_vm14, %v1507_v50, %v778_v14  ;;  %v303_v26 = vsel %vm269_vm9, %v1387_v10, %v235_v29  ;;  %vm473_vm2 = vcmp.gt.f32.partialorder %v2514_v9, %v1425_v22  ;;  %vm541_vm3 = vcmp.gt.f32.partialorder %v2514_v9, %v1440_v27 }
  0xa0   : > { %v914_v0 = vsel %vm880_vm6, %v1522_v55, %v846_v31  ;;  %v371_v23 = vsel %vm337_vm10, %v1402_v15, %v303_v26  ;;  %vm609_vm12 = vcmp.gt.f32.partialorder %v2514_v9, %v1455_v32  ;;  %vm677_vm4 = vcmp.gt.f32.partialorder %v2514_v9, %v1470_v37 }
  0xa1   : > { %v982_v33 = vsel %vm948_vm7, %v1537_v60, %v914_v0  ;;  %v439_v34 = vsel %vm405_vm0, %v1417_v20, %v371_v23  ;;  %vm745_vm5 = vcmp.gt.f32.partialorder %v2514_v9, %v1485_v42  ;;  %vm813_vm13 = vcmp.gt.f32.partialorder %v2514_v9, %v1500_v47 }
  0xa2   : > { %v1050_v28 = vsel %vm1016_vm15, %v1552_v8, %v982_v33  ;;  %v507_v38 = vsel %vm473_vm2, %v1432_v25, %v439_v34  ;;  %vm881_vm14 = vcmp.gt.f32.partialorder %v2514_v9, %v1515_v52  ;;  %vm949_vm6 = vcmp.gt.f32.partialorder %v2514_v9, %v1530_v57  ;;  %v2706_v34 = vld [vmem:[%s1351_s17 + $0xa8] sm:$0xff] }
  0xa3   : > { %v1118_v2 = vsel %vm1084_vm11, %v1570_v18, %v1050_v28  ;;  %v575_v41 = vsel %vm541_vm3, %v1447_v30, %v507_v38  ;;  %vm1017_vm7 = vcmp.gt.f32.partialorder %v2514_v9, %v1545_v62  ;;  %vm202_vm15 = vcmp.gt.f32.partialorder %v2567_v36, %v1364_v3 }
  0xa4   : > { %v1185_v46 = vsel %vm1152_vm1, %v1368_v4, %v1118_v2  ;;  %v643_v48 = vsel %vm609_vm12, %v1462_v35, %v575_v41  ;;  %vm270_vm8 = vcmp.gt.f32.partialorder %v2567_v36, %v1380_v7  ;;  %v236_v53 = vsel %vm202_vm15, %v1372_v5, 0.0 }
  0xa5   : > { %1217 = vst [vmem:[%s1581_s24 + $0x88] sm:$0xff] %v1185_v46  ;;  %v711_v1 = vsel %vm677_vm4, %v1477_v40, %v643_v48  ;;  %vm338_vm9 = vcmp.gt.f32.partialorder %v2567_v36, %v1395_v12  ;;  %vm406_vm10 = vcmp.gt.f32.partialorder %v2567_v36, %v1410_v17  ;;  %vm1085_vm11 = vcmp.gt.f32.partialorder %v2514_v9, %v1560_v11 }
  0xa6   : > { %v779_v39 = vsel %vm745_vm5, %v1492_v45, %v711_v1  ;;  %v304_v49 = vsel %vm270_vm8, %v1387_v10, %v236_v53  ;;  %vm474_vm0 = vcmp.gt.f32.partialorder %v2567_v36, %v1425_v22  ;;  %vm1153_vm1 = vcmp.gt.f32.partialorder %v2514_v9, %v1584_v21 }
  0xa7   : > { %v847_v44 = vsel %vm813_vm13, %v1507_v50, %v779_v39  ;;  %v372_v56 = vsel %vm338_vm9, %v1402_v15, %v304_v49  ;;  %vm542_vm2 = vcmp.gt.f32.partialorder %v2567_v36, %v1440_v27  ;;  %vm610_vm3 = vcmp.gt.f32.partialorder %v2567_v36, %v1455_v32 }
  0xa8   : > { %v915_v43 = vsel %vm881_vm14, %v1522_v55, %v847_v44  ;;  %v440_v58 = vsel %vm406_vm10, %v1417_v20, %v372_v56  ;;  %vm678_vm12 = vcmp.gt.f32.partialorder %v2567_v36, %v1470_v37  ;;  %vm746_vm4 = vcmp.gt.f32.partialorder %v2567_v36, %v1485_v42 }
  0xa9   : > { %v983_v59 = vsel %vm949_vm6, %v1537_v60, %v915_v43  ;;  %v508_v51 = vsel %vm474_vm0, %v1432_v25, %v440_v58  ;;  %vm814_vm5 = vcmp.gt.f32.partialorder %v2567_v36, %v1500_v47  ;;  %vm882_vm13 = vcmp.gt.f32.partialorder %v2567_v36, %v1515_v52 }
  0xaa   : > { %v1051_v61 = vsel %vm1017_vm7, %v1552_v8, %v983_v59  ;;  %v576_v6 = vsel %vm542_vm2, %v1447_v30, %v508_v51  ;;  %vm950_vm14 = vcmp.gt.f32.partialorder %v2567_v36, %v1530_v57  ;;  %vm1018_vm6 = vcmp.gt.f32.partialorder %v2567_v36, %v1545_v62  ;;  %v2767_v51 = vld [vmem:[%s1351_s17 + $0xb0] sm:$0xff] }
  0xab   : > { %v1119_v13 = vsel %vm1085_vm11, %v1570_v18, %v1051_v61  ;;  %v644_v19 = vsel %vm610_vm3, %v1462_v35, %v576_v6  ;;  %vm203_vm7 = vcmp.gt.f32.partialorder %v2634_v54, %v1364_v3  ;;  %vm271_vm15 = vcmp.gt.f32.partialorder %v2634_v54, %v1380_v7 }
  0xac   : > { %v1186_v63 = vsel %vm1153_vm1, %v1368_v4, %v1119_v13  ;;  %v712_v24 = vsel %vm678_vm12, %v1477_v40, %v644_v19  ;;  %v237_v16 = vsel %vm203_vm7, %v1372_v5, 0.0  ;;  %vm339_vm8 = vcmp.gt.f32.partialorder %v2634_v54, %v1395_v12 }
  0xad   : > { %1218 = vst [vmem:[%s1581_s24 + $0x90] sm:$0xff] %v1186_v63  ;;  %v780_v14 = vsel %vm746_vm4, %v1492_v45, %v712_v24  ;;  %v305_v29 = vsel %vm271_vm15, %v1387_v10, %v237_v16  ;;  %vm407_vm9 = vcmp.gt.f32.partialorder %v2634_v54, %v1410_v17  ;;  %vm475_vm10 = vcmp.gt.f32.partialorder %v2634_v54, %v1425_v22 }
  0xae   : > { %v848_v9 = vsel %vm814_vm5, %v1507_v50, %v780_v14  ;;  %v373_v31 = vsel %vm339_vm8, %v1402_v15, %v305_v29  ;;  %vm543_vm11 = vcmp.gt.f32.partialorder %v2634_v54, %v1440_v27  ;;  %vm1086_vm0 = vcmp.gt.f32.partialorder %v2567_v36, %v1560_v11 }
  0xaf   : > { %v916_v26 = vsel %vm882_vm13, %v1522_v55, %v848_v9  ;;  %v441_v0 = vsel %vm407_vm9, %v1417_v20, %v373_v31  ;;  %vm611_vm1 = vcmp.gt.f32.partialorder %v2634_v54, %v1455_v32  ;;  %vm1154_vm2 = vcmp.gt.f32.partialorder %v2567_v36, %v1584_v21 }
  0xb0   : > { %v984_v23 = vsel %vm950_vm14, %v1537_v60, %v916_v26  ;;  %v509_v33 = vsel %vm475_vm10, %v1432_v25, %v441_v0  ;;  %vm679_vm3 = vcmp.gt.f32.partialorder %v2634_v54, %v1470_v37  ;;  %vm747_vm12 = vcmp.gt.f32.partialorder %v2634_v54, %v1485_v42  ;;  %v2820_v0 = vld [vmem:[%s1351_s17 + $0xb8] sm:$0xff] }
  0xb1   : > { %v1052_v28 = vsel %vm1018_vm6, %v1552_v8, %v984_v23  ;;  %v577_v38 = vsel %vm543_vm11, %v1447_v30, %v509_v33  ;;  %vm815_vm4 = vcmp.gt.f32.partialorder %v2634_v54, %v1500_v47  ;;  %vm883_vm5 = vcmp.gt.f32.partialorder %v2634_v54, %v1515_v52 }
  0xb2   : > { %v1120_v2 = vsel %vm1086_vm0, %v1570_v18, %v1052_v28  ;;  %v645_v41 = vsel %vm611_vm1, %v1462_v35, %v577_v38  ;;  %vm951_vm13 = vcmp.gt.f32.partialorder %v2634_v54, %v1530_v57  ;;  %vm1019_vm14 = vcmp.gt.f32.partialorder %v2634_v54, %v1545_v62 }
  0xb3   : > { %v1187_v36 = vsel %vm1154_vm2, %v1368_v4, %v1120_v2  ;;  %v713_v46 = vsel %vm679_vm3, %v1477_v40, %v645_v41  ;;  %vm204_vm6 = vcmp.gt.f32.partialorder %v2706_v34, %v1364_v3  ;;  %vm272_vm7 = vcmp.gt.f32.partialorder %v2706_v34, %v1380_v7 }
  0xb4   : > { %1219 = vst [vmem:[%s1581_s24 + $0x98] sm:$0xff] %v1187_v36  ;;  %v781_v48 = vsel %vm747_vm12, %v1492_v45, %v713_v46  ;;  %v238_v1 = vsel %vm204_vm6, %v1372_v5, 0.0  ;;  %vm340_vm15 = vcmp.gt.f32.partialorder %v2706_v34, %v1395_v12  ;;  %vm408_vm8 = vcmp.gt.f32.partialorder %v2706_v34, %v1410_v17 }
  0xb5   : > { %v849_v53 = vsel %vm815_vm4, %v1507_v50, %v781_v48  ;;  %v306_v39 = vsel %vm272_vm7, %v1387_v10, %v238_v1  ;;  %vm476_vm9 = vcmp.gt.f32.partialorder %v2706_v34, %v1425_v22  ;;  %vm1087_vm10 = vcmp.gt.f32.partialorder %v2634_v54, %v1560_v11 }
  0xb6   : > { %v917_v49 = vsel %vm883_vm5, %v1522_v55, %v849_v53  ;;  %v374_v44 = vsel %vm340_vm15, %v1402_v15, %v306_v39  ;;  %vm544_vm11 = vcmp.gt.f32.partialorder %v2706_v34, %v1440_v27  ;;  %vm1155_vm0 = vcmp.gt.f32.partialorder %v2634_v54, %v1584_v21 }
  0xb7   : > { %v985_v56 = vsel %vm951_vm13, %v1537_v60, %v917_v49  ;;  %v442_v43 = vsel %vm408_vm8, %v1417_v20, %v374_v44  ;;  %vm612_vm1 = vcmp.gt.f32.partialorder %v2706_v34, %v1455_v32  ;;  %vm680_vm2 = vcmp.gt.f32.partialorder %v2706_v34, %v1470_v37  ;;  %v2887_v44 = vld [vmem:[%s1351_s17 + $0xc0] sm:$0xff] }
  0xb8   : > { %v1053_v58 = vsel %vm1019_vm14, %v1552_v8, %v985_v56  ;;  %v510_v59 = vsel %vm476_vm9, %v1432_v25, %v442_v43  ;;  %vm748_vm3 = vcmp.gt.f32.partialorder %v2706_v34, %v1485_v42  ;;  %vm816_vm12 = vcmp.gt.f32.partialorder %v2706_v34, %v1500_v47 }
  0xb9   : > { %v1121_v61 = vsel %vm1087_vm10, %v1570_v18, %v1053_v58  ;;  %v578_v6 = vsel %vm544_vm11, %v1447_v30, %v510_v59  ;;  %vm884_vm4 = vcmp.gt.f32.partialorder %v2706_v34, %v1515_v52  ;;  %vm952_vm5 = vcmp.gt.f32.partialorder %v2706_v34, %v1530_v57 }
  0xba   : > { %v1188_v54 = vsel %vm1155_vm0, %v1368_v4, %v1121_v61  ;;  %v646_v13 = vsel %vm612_vm1, %v1462_v35, %v578_v6  ;;  %vm1020_vm13 = vcmp.gt.f32.partialorder %v2706_v34, %v1545_v62  ;;  %vm205_vm14 = vcmp.gt.f32.partialorder %v2767_v51, %v1364_v3 }
  0xbb   : > { %1220 = vst [vmem:[%s1581_s24 + $0xa0] sm:$0xff] %v1188_v54  ;;  %v714_v19 = vsel %vm680_vm2, %v1477_v40, %v646_v13  ;;  %vm273_vm6 = vcmp.gt.f32.partialorder %v2767_v51, %v1380_v7  ;;  %vm341_vm7 = vcmp.gt.f32.partialorder %v2767_v51, %v1395_v12  ;;  %vm1088_vm15 = vcmp.gt.f32.partialorder %v2706_v34, %v1560_v11 }
  0xbc   : > { %v782_v63 = vsel %vm748_vm3, %v1492_v45, %v714_v19  ;;  %v239_v24 = vsel %vm205_vm14, %v1372_v5, 0.0  ;;  %vm409_vm8 = vcmp.gt.f32.partialorder %v2767_v51, %v1410_v17  ;;  %vm1156_vm9 = vcmp.gt.f32.partialorder %v2706_v34, %v1584_v21 }
  0xbd   : > { %v850_v16 = vsel %vm816_vm12, %v1507_v50, %v782_v63  ;;  %v307_v14 = vsel %vm273_vm6, %v1387_v10, %v239_v24  ;;  %vm477_vm10 = vcmp.gt.f32.partialorder %v2767_v51, %v1425_v22  ;;  %vm545_vm11 = vcmp.gt.f32.partialorder %v2767_v51, %v1440_v27 }
  0xbe   : > { %v918_v29 = vsel %vm884_vm4, %v1522_v55, %v850_v16  ;;  %v375_v9 = vsel %vm341_vm7, %v1402_v15, %v307_v14  ;;  %vm613_vm0 = vcmp.gt.f32.partialorder %v2767_v51, %v1455_v32  ;;  %vm681_vm1 = vcmp.gt.f32.partialorder %v2767_v51, %v1470_v37 }
  0xbf   : > { %v986_v31 = vsel %vm952_vm5, %v1537_v60, %v918_v29  ;;  %v443_v26 = vsel %vm409_vm8, %v1417_v20, %v375_v9  ;;  %vm749_vm2 = vcmp.gt.f32.partialorder %v2767_v51, %v1485_v42  ;;  %vm817_vm3 = vcmp.gt.f32.partialorder %v2767_v51, %v1500_v47 }
  0xc0   : > { %v1054_v23 = vsel %vm1020_vm13, %v1552_v8, %v986_v31  ;;  %v511_v33 = vsel %vm477_vm10, %v1432_v25, %v443_v26  ;;  %vm885_vm12 = vcmp.gt.f32.partialorder %v2767_v51, %v1515_v52  ;;  %vm953_vm4 = vcmp.gt.f32.partialorder %v2767_v51, %v1530_v57  ;;  %v2959_v26 = vld [vmem:[%s1351_s17 + $0xc8] sm:$0xff] }
  0xc1   : > { %v1122_v28 = vsel %vm1088_vm15, %v1570_v18, %v1054_v23  ;;  %v579_v38 = vsel %vm545_vm11, %v1447_v30, %v511_v33  ;;  %vm1021_vm5 = vcmp.gt.f32.partialorder %v2767_v51, %v1545_v62  ;;  %vm206_vm13 = vcmp.gt.f32.partialorder %v2820_v0, %v1364_v3 }
  0xc2   : > { %v1189_v2 = vsel %vm1156_vm9, %v1368_v4, %v1122_v28  ;;  %v647_v41 = vsel %vm613_vm0, %v1462_v35, %v579_v38  ;;  %vm274_vm14 = vcmp.gt.f32.partialorder %v2820_v0, %v1380_v7  ;;  %v240_v46 = vsel %vm206_vm13, %v1372_v5, 0.0 }
  0xc3   : > { %1221 = vst [vmem:[%s1581_s24 + $0xa8] sm:$0xff] %v1189_v2  ;;  %v715_v36 = vsel %vm681_vm1, %v1477_v40, %v647_v41  ;;  %vm342_vm6 = vcmp.gt.f32.partialorder %v2820_v0, %v1395_v12  ;;  %vm410_vm7 = vcmp.gt.f32.partialorder %v2820_v0, %v1410_v17  ;;  %vm1089_vm15 = vcmp.gt.f32.partialorder %v2767_v51, %v1560_v11 }
  0xc4   : > { %v783_v34 = vsel %vm749_vm2, %v1492_v45, %v715_v36  ;;  %v308_v48 = vsel %vm274_vm14, %v1387_v10, %v240_v46  ;;  %vm478_vm8 = vcmp.gt.f32.partialorder %v2820_v0, %v1425_v22  ;;  %vm1157_vm9 = vcmp.gt.f32.partialorder %v2767_v51, %v1584_v21 }
  0xc5   : > { %v851_v1 = vsel %vm817_vm3, %v1507_v50, %v783_v34  ;;  %v376_v53 = vsel %vm342_vm6, %v1402_v15, %v308_v48  ;;  %vm546_vm10 = vcmp.gt.f32.partialorder %v2820_v0, %v1440_v27  ;;  %vm614_vm11 = vcmp.gt.f32.partialorder %v2820_v0, %v1455_v32 }
  0xc6   : > { %v919_v39 = vsel %vm885_vm12, %v1522_v55, %v851_v1  ;;  %v444_v49 = vsel %vm410_vm7, %v1417_v20, %v376_v53  ;;  %vm682_vm0 = vcmp.gt.f32.partialorder %v2820_v0, %v1470_v37  ;;  %vm750_vm1 = vcmp.gt.f32.partialorder %v2820_v0, %v1485_v42 }
  0xc7   : > { %v987_v56 = vsel %vm953_vm4, %v1537_v60, %v919_v39  ;;  %v512_v43 = vsel %vm478_vm8, %v1432_v25, %v444_v49  ;;  %vm818_vm2 = vcmp.gt.f32.partialorder %v2820_v0, %v1500_v47  ;;  %vm886_vm3 = vcmp.gt.f32.partialorder %v2820_v0, %v1515_v52 }
  0xc8   : > { %v1055_v58 = vsel %vm1021_vm5, %v1552_v8, %v987_v56  ;;  %v580_v59 = vsel %vm546_vm10, %v1447_v30, %v512_v43  ;;  %vm954_vm12 = vcmp.gt.f32.partialorder %v2820_v0, %v1530_v57  ;;  %vm1022_vm4 = vcmp.gt.f32.partialorder %v2820_v0, %v1545_v62  ;;  %v3020_v43 = vld [vmem:[%s1351_s17 + $0xd0] sm:$0xff] }
  0xc9   : > { %v1123_v61 = vsel %vm1089_vm15, %v1570_v18, %v1055_v58  ;;  %v648_v6 = vsel %vm614_vm11, %v1462_v35, %v580_v59  ;;  %vm207_vm5 = vcmp.gt.f32.partialorder %v2887_v44, %v1364_v3  ;;  %vm275_vm13 = vcmp.gt.f32.partialorder %v2887_v44, %v1380_v7 }
  0xca   : > { %v1190_v54 = vsel %vm1157_vm9, %v1368_v4, %v1123_v61  ;;  %v716_v13 = vsel %vm682_vm0, %v1477_v40, %v648_v6  ;;  %v241_v19 = vsel %vm207_vm5, %v1372_v5, 0.0  ;;  %vm343_vm14 = vcmp.gt.f32.partialorder %v2887_v44, %v1395_v12 }
  0xcb   : > { %1222 = vst [vmem:[%s1581_s24 + $0xb0] sm:$0xff] %v1190_v54  ;;  %v784_v63 = vsel %vm750_vm1, %v1492_v45, %v716_v13  ;;  %v309_v24 = vsel %vm275_vm13, %v1387_v10, %v241_v19  ;;  %vm411_vm6 = vcmp.gt.f32.partialorder %v2887_v44, %v1410_v17  ;;  %vm479_vm7 = vcmp.gt.f32.partialorder %v2887_v44, %v1425_v22 }
  0xcc   : > { %v852_v51 = vsel %vm818_vm2, %v1507_v50, %v784_v63  ;;  %v377_v16 = vsel %vm343_vm14, %v1402_v15, %v309_v24  ;;  %vm547_vm15 = vcmp.gt.f32.partialorder %v2887_v44, %v1440_v27  ;;  %vm1090_vm8 = vcmp.gt.f32.partialorder %v2820_v0, %v1560_v11 }
  0xcd   : > { %v920_v14 = vsel %vm886_vm3, %v1522_v55, %v852_v51  ;;  %v445_v29 = vsel %vm411_vm6, %v1417_v20, %v377_v16  ;;  %vm615_vm9 = vcmp.gt.f32.partialorder %v2887_v44, %v1455_v32  ;;  %vm1158_vm10 = vcmp.gt.f32.partialorder %v2820_v0, %v1584_v21 }
  0xce   : > { %v988_v9 = vsel %vm954_vm12, %v1537_v60, %v920_v14  ;;  %v513_v31 = vsel %vm479_vm7, %v1432_v25, %v445_v29  ;;  %vm683_vm11 = vcmp.gt.f32.partialorder %v2887_v44, %v1470_v37  ;;  %vm751_vm0 = vcmp.gt.f32.partialorder %v2887_v44, %v1485_v42  ;;  %v3073_v29 = vld [vmem:[%s1351_s17 + $0xd8] sm:$0xff] }
  0xcf   : > { %v1056_v23 = vsel %vm1022_vm4, %v1552_v8, %v988_v9  ;;  %v581_v33 = vsel %vm547_vm15, %v1447_v30, %v513_v31  ;;  %vm819_vm1 = vcmp.gt.f32.partialorder %v2887_v44, %v1500_v47  ;;  %vm887_vm2 = vcmp.gt.f32.partialorder %v2887_v44, %v1515_v52 }
  0xd0   : > { %v1124_v28 = vsel %vm1090_vm8, %v1570_v18, %v1056_v23  ;;  %v649_v38 = vsel %vm615_vm9, %v1462_v35, %v581_v33  ;;  %vm955_vm3 = vcmp.gt.f32.partialorder %v2887_v44, %v1530_v57  ;;  %vm1023_vm12 = vcmp.gt.f32.partialorder %v2887_v44, %v1545_v62 }
  0xd1   : > { %v1191_v0 = vsel %vm1158_vm10, %v1368_v4, %v1124_v28  ;;  %v717_v2 = vsel %vm683_vm11, %v1477_v40, %v649_v38  ;;  %vm208_vm4 = vcmp.gt.f32.partialorder %v2959_v26, %v1364_v3  ;;  %vm276_vm5 = vcmp.gt.f32.partialorder %v2959_v26, %v1380_v7 }
  0xd2   : > { %1223 = vst [vmem:[%s1581_s24 + $0xb8] sm:$0xff] %v1191_v0  ;;  %v785_v41 = vsel %vm751_vm0, %v1492_v45, %v717_v2  ;;  %v242_v36 = vsel %vm208_vm4, %v1372_v5, 0.0  ;;  %vm344_vm13 = vcmp.gt.f32.partialorder %v2959_v26, %v1395_v12  ;;  %vm412_vm14 = vcmp.gt.f32.partialorder %v2959_v26, %v1410_v17 }
  0xd3   : > { %v853_v46 = vsel %vm819_vm1, %v1507_v50, %v785_v41  ;;  %v310_v34 = vsel %vm276_vm5, %v1387_v10, %v242_v36  ;;  %vm480_vm6 = vcmp.gt.f32.partialorder %v2959_v26, %v1425_v22  ;;  %vm1091_vm7 = vcmp.gt.f32.partialorder %v2887_v44, %v1560_v11 }
  0xd4   : > { %v921_v48 = vsel %vm887_vm2, %v1522_v55, %v853_v46  ;;  %v378_v1 = vsel %vm344_vm13, %v1402_v15, %v310_v34  ;;  %vm548_vm15 = vcmp.gt.f32.partialorder %v2959_v26, %v1440_v27  ;;  %vm1159_vm8 = vcmp.gt.f32.partialorder %v2887_v44, %v1584_v21 }
  0xd5   : > { %v989_v53 = vsel %vm955_vm3, %v1537_v60, %v921_v48  ;;  %v446_v39 = vsel %vm412_vm14, %v1417_v20, %v378_v1  ;;  %vm616_vm9 = vcmp.gt.f32.partialorder %v2959_v26, %v1455_v32  ;;  %vm684_vm10 = vcmp.gt.f32.partialorder %v2959_v26, %v1470_v37  ;;  %v3140_v1 = vld [vmem:[%s1351_s17 + $0xe0] sm:$0xff] }
  0xd6   : > { %v1057_v49 = vsel %vm1023_vm12, %v1552_v8, %v989_v53  ;;  %v514_v56 = vsel %vm480_vm6, %v1432_v25, %v446_v39  ;;  %vm752_vm11 = vcmp.gt.f32.partialorder %v2959_v26, %v1485_v42  ;;  %vm820_vm0 = vcmp.gt.f32.partialorder %v2959_v26, %v1500_v47 }
  0xd7   : > { %v1125_v58 = vsel %vm1091_vm7, %v1570_v18, %v1057_v49  ;;  %v582_v59 = vsel %vm548_vm15, %v1447_v30, %v514_v56  ;;  %vm888_vm1 = vcmp.gt.f32.partialorder %v2959_v26, %v1515_v52  ;;  %vm956_vm2 = vcmp.gt.f32.partialorder %v2959_v26, %v1530_v57 }
  0xd8   : > { %v1192_v44 = vsel %vm1159_vm8, %v1368_v4, %v1125_v58  ;;  %v650_v61 = vsel %vm616_vm9, %v1462_v35, %v582_v59  ;;  %vm1024_vm3 = vcmp.gt.f32.partialorder %v2959_v26, %v1545_v62  ;;  %vm209_vm12 = vcmp.gt.f32.partialorder %v3020_v43, %v1364_v3 }
  0xd9   : > { %1224 = vst [vmem:[%s1581_s24 + $0xc0] sm:$0xff] %v1192_v44  ;;  %v718_v6 = vsel %vm684_vm10, %v1477_v40, %v650_v61  ;;  %vm277_vm4 = vcmp.gt.f32.partialorder %v3020_v43, %v1380_v7  ;;  %vm345_vm5 = vcmp.gt.f32.partialorder %v3020_v43, %v1395_v12  ;;  %vm1092_vm13 = vcmp.gt.f32.partialorder %v2959_v26, %v1560_v11 }
  0xda   : > { %v786_v54 = vsel %vm752_vm11, %v1492_v45, %v718_v6  ;;  %v243_v13 = vsel %vm209_vm12, %v1372_v5, 0.0  ;;  %vm413_vm14 = vcmp.gt.f32.partialorder %v3020_v43, %v1410_v17  ;;  %vm1160_vm6 = vcmp.gt.f32.partialorder %v2959_v26, %v1584_v21 }
  0xdb   : > { %v854_v19 = vsel %vm820_vm0, %v1507_v50, %v786_v54  ;;  %v311_v63 = vsel %vm277_vm4, %v1387_v10, %v243_v13  ;;  %vm481_vm7 = vcmp.gt.f32.partialorder %v3020_v43, %v1425_v22  ;;  %vm549_vm15 = vcmp.gt.f32.partialorder %v3020_v43, %v1440_v27 }
  0xdc   : > { %v922_v24 = vsel %vm888_vm1, %v1522_v55, %v854_v19  ;;  %v379_v51 = vsel %vm345_vm5, %v1402_v15, %v311_v63  ;;  %vm617_vm8 = vcmp.gt.f32.partialorder %v3020_v43, %v1455_v32  ;;  %vm685_vm9 = vcmp.gt.f32.partialorder %v3020_v43, %v1470_v37 }
  0xdd   : > { %v990_v16 = vsel %vm956_vm2, %v1537_v60, %v922_v24  ;;  %v447_v14 = vsel %vm413_vm14, %v1417_v20, %v379_v51  ;;  %vm753_vm10 = vcmp.gt.f32.partialorder %v3020_v43, %v1485_v42  ;;  %vm821_vm11 = vcmp.gt.f32.partialorder %v3020_v43, %v1500_v47 }
  0xde   : > { %v1058_v9 = vsel %vm1024_vm3, %v1552_v8, %v990_v16  ;;  %v515_v31 = vsel %vm481_vm7, %v1432_v25, %v447_v14  ;;  %vm889_vm0 = vcmp.gt.f32.partialorder %v3020_v43, %v1515_v52  ;;  %vm957_vm1 = vcmp.gt.f32.partialorder %v3020_v43, %v1530_v57  ;;  %v3212_v14 = vld [vmem:[%s1351_s17 + $0xe8] sm:$0xff] }
  0xdf   : > { %v1126_v23 = vsel %vm1092_vm13, %v1570_v18, %v1058_v9  ;;  %v583_v33 = vsel %vm549_vm15, %v1447_v30, %v515_v31  ;;  %vm1025_vm2 = vcmp.gt.f32.partialorder %v3020_v43, %v1545_v62  ;;  %vm210_vm3 = vcmp.gt.f32.partialorder %v3073_v29, %v1364_v3 }
  0xe0   : > { %v1193_v28 = vsel %vm1160_vm6, %v1368_v4, %v1126_v23  ;;  %v651_v38 = vsel %vm617_vm8, %v1462_v35, %v583_v33  ;;  %vm278_vm12 = vcmp.gt.f32.partialorder %v3073_v29, %v1380_v7  ;;  %v244_v2 = vsel %vm210_vm3, %v1372_v5, 0.0 }
  0xe1   : > { %1225 = vst [vmem:[%s1581_s24 + $0xc8] sm:$0xff] %v1193_v28  ;;  %v719_v0 = vsel %vm685_vm9, %v1477_v40, %v651_v38  ;;  %vm346_vm4 = vcmp.gt.f32.partialorder %v3073_v29, %v1395_v12  ;;  %vm414_vm5 = vcmp.gt.f32.partialorder %v3073_v29, %v1410_v17  ;;  %vm1093_vm13 = vcmp.gt.f32.partialorder %v3020_v43, %v1560_v11 }
  0xe2   : > { %v787_v26 = vsel %vm753_vm10, %v1492_v45, %v719_v0  ;;  %v312_v41 = vsel %vm278_vm12, %v1387_v10, %v244_v2  ;;  %vm482_vm14 = vcmp.gt.f32.partialorder %v3073_v29, %v1425_v22  ;;  %vm1161_vm6 = vcmp.gt.f32.partialorder %v3020_v43, %v1584_v21 }
  0xe3   : > { %v855_v36 = vsel %vm821_vm11, %v1507_v50, %v787_v26  ;;  %v380_v46 = vsel %vm346_vm4, %v1402_v15, %v312_v41  ;;  %vm550_vm7 = vcmp.gt.f32.partialorder %v3073_v29, %v1440_v27  ;;  %vm618_vm15 = vcmp.gt.f32.partialorder %v3073_v29, %v1455_v32 }
  0xe4   : > { %v923_v34 = vsel %vm889_vm0, %v1522_v55, %v855_v36  ;;  %v448_v48 = vsel %vm414_vm5, %v1417_v20, %v380_v46  ;;  %vm686_vm8 = vcmp.gt.f32.partialorder %v3073_v29, %v1470_v37  ;;  %vm754_vm9 = vcmp.gt.f32.partialorder %v3073_v29, %v1485_v42 }
  0xe5   : > { %v991_v53 = vsel %vm957_vm1, %v1537_v60, %v923_v34  ;;  %v516_v39 = vsel %vm482_vm14, %v1432_v25, %v448_v48  ;;  %vm822_vm10 = vcmp.gt.f32.partialorder %v3073_v29, %v1500_v47  ;;  %vm890_vm11 = vcmp.gt.f32.partialorder %v3073_v29, %v1515_v52 }
  0xe6   : > { %v1059_v49 = vsel %vm1025_vm2, %v1552_v8, %v991_v53  ;;  %v584_v56 = vsel %vm550_vm7, %v1447_v30, %v516_v39  ;;  %vm958_vm0 = vcmp.gt.f32.partialorder %v3073_v29, %v1530_v57  ;;  %vm1026_vm1 = vcmp.gt.f32.partialorder %v3073_v29, %v1545_v62  ;;  %v3271_v39 = vld [vmem:[%s1351_s17 + $0xf0] sm:$0xff] }
  0xe7   : > { %v1127_v58 = vsel %vm1093_vm13, %v1570_v18, %v1059_v49  ;;  %v652_v59 = vsel %vm618_vm15, %v1462_v35, %v584_v56  ;;  %vm211_vm2 = vcmp.gt.f32.partialorder %v3140_v1, %v1364_v3  ;;  %vm279_vm3 = vcmp.gt.f32.partialorder %v3140_v1, %v1380_v7 }
  0xe8   : > { %v1194_v44 = vsel %vm1161_vm6, %v1368_v4, %v1127_v58  ;;  %v720_v61 = vsel %vm686_vm8, %v1477_v40, %v652_v59  ;;  %v245_v6 = vsel %vm211_vm2, %v1372_v5, 0.0  ;;  %vm347_vm12 = vcmp.gt.f32.partialorder %v3140_v1, %v1395_v12 }
  0xe9   : > { %1226 = vst [vmem:[%s1581_s24 + $0xd0] sm:$0xff] %v1194_v44  ;;  %v788_v54 = vsel %vm754_vm9, %v1492_v45, %v720_v61  ;;  %v313_v13 = vsel %vm279_vm3, %v1387_v10, %v245_v6  ;;  %vm415_vm4 = vcmp.gt.f32.partialorder %v3140_v1, %v1410_v17  ;;  %vm483_vm5 = vcmp.gt.f32.partialorder %v3140_v1, %v1425_v22 }
  0xea   : > { %v856_v43 = vsel %vm822_vm10, %v1507_v50, %v788_v54  ;;  %v381_v19 = vsel %vm347_vm12, %v1402_v15, %v313_v13  ;;  %vm551_vm13 = vcmp.gt.f32.partialorder %v3140_v1, %v1440_v27  ;;  %vm1094_vm14 = vcmp.gt.f32.partialorder %v3073_v29, %v1560_v11 }
  0xeb   : > { %v924_v63 = vsel %vm890_vm11, %v1522_v55, %v856_v43  ;;  %v449_v24 = vsel %vm415_vm4, %v1417_v20, %v381_v19  ;;  %vm619_vm6 = vcmp.gt.f32.partialorder %v3140_v1, %v1455_v32  ;;  %vm1162_vm7 = vcmp.gt.f32.partialorder %v3073_v29, %v1584_v21 }
  0xec   : > { %v992_v51 = vsel %vm958_vm0, %v1537_v60, %v924_v63  ;;  %v517_v16 = vsel %vm483_vm5, %v1432_v25, %v449_v24  ;;  %vm687_vm15 = vcmp.gt.f32.partialorder %v3140_v1, %v1470_v37  ;;  %vm755_vm8 = vcmp.gt.f32.partialorder %v3140_v1, %v1485_v42  ;;  %v180_v24 = vld [vmem:[%s1351_s17 + $0xf8] sm:$0xff] }
  0xed   : > { %v1060_v9 = vsel %vm1026_vm1, %v1552_v8, %v992_v51  ;;  %v585_v31 = vsel %vm551_vm13, %v1447_v30, %v517_v16  ;;  %vm823_vm9 = vcmp.gt.f32.partialorder %v3140_v1, %v1500_v47  ;;  %vm891_vm10 = vcmp.gt.f32.partialorder %v3140_v1, %v1515_v52 }
  0xee   : > { %v1128_v23 = vsel %vm1094_vm14, %v1570_v18, %v1060_v9  ;;  %v653_v33 = vsel %vm619_vm6, %v1462_v35, %v585_v31  ;;  %vm959_vm11 = vcmp.gt.f32.partialorder %v3140_v1, %v1530_v57  ;;  %vm1027_vm0 = vcmp.gt.f32.partialorder %v3140_v1, %v1545_v62 }
  0xef   : > { %v1195_v29 = vsel %vm1162_vm7, %v1368_v4, %v1128_v23  ;;  %v721_v28 = vsel %vm687_vm15, %v1477_v40, %v653_v33  ;;  %vm212_vm1 = vcmp.gt.f32.partialorder %v3212_v14, %v1364_v3  ;;  %vm280_vm2 = vcmp.gt.f32.partialorder %v3212_v14, %v1380_v7 }
  0xf0   : > { %1227 = vst [vmem:[%s1581_s24 + $0xd8] sm:$0xff] %v1195_v29  ;;  %v789_v38 = vsel %vm755_vm8, %v1492_v45, %v721_v28  ;;  %v246_v0 = vsel %vm212_vm1, %v1372_v5, 0.0  ;;  %vm348_vm3 = vcmp.gt.f32.partialorder %v3212_v14, %v1395_v12  ;;  %vm416_vm12 = vcmp.gt.f32.partialorder %v3212_v14, %v1410_v17 }
  0xf1   : > { %v857_v2 = vsel %vm823_vm9, %v1507_v50, %v789_v38  ;;  %v314_v26 = vsel %vm280_vm2, %v1387_v10, %v246_v0  ;;  %vm484_vm4 = vcmp.gt.f32.partialorder %v3212_v14, %v1425_v22  ;;  %vm1095_vm5 = vcmp.gt.f32.partialorder %v3140_v1, %v1560_v11 }
  0xf2   : > { %v925_v41 = vsel %vm891_vm10, %v1522_v55, %v857_v2  ;;  %v382_v36 = vsel %vm348_vm3, %v1402_v15, %v314_v26  ;;  %vm552_vm13 = vcmp.gt.f32.partialorder %v3212_v14, %v1440_v27  ;;  %vm1163_vm14 = vcmp.gt.f32.partialorder %v3140_v1, %v1584_v21 }
  0xf3   : > { %v993_v46 = vsel %vm959_vm11, %v1537_v60, %v925_v41  ;;  %v450_v34 = vsel %vm416_vm12, %v1417_v20, %v382_v36  ;;  %vm620_vm6 = vcmp.gt.f32.partialorder %v3212_v14, %v1455_v32  ;;  %vm688_vm7 = vcmp.gt.f32.partialorder %v3212_v14, %v1470_v37 }
  0xf4   : > { %v1061_v48 = vsel %vm1027_vm0, %v1552_v8, %v993_v46  ;;  %v518_v53 = vsel %vm484_vm4, %v1432_v25, %v450_v34  ;;  %vm756_vm15 = vcmp.gt.f32.partialorder %v3212_v14, %v1485_v42  ;;  %vm824_vm8 = vcmp.gt.f32.partialorder %v3212_v14, %v1500_v47 }
  0xf5   : > { %v1129_v49 = vsel %vm1095_vm5, %v1570_v18, %v1061_v48  ;;  %v586_v56 = vsel %vm552_vm13, %v1447_v30, %v518_v53  ;;  %vm892_vm9 = vcmp.gt.f32.partialorder %v3212_v14, %v1515_v52  ;;  %vm213_vm10 = vcmp.gt.f32.partialorder %v3271_v39, %v1364_v3 }
  0xf6   : > { %v1196_v58 = vsel %vm1163_vm14, %v1368_v4, %v1129_v49  ;;  %v654_v59 = vsel %vm620_vm6, %v1462_v35, %v586_v56  ;;  %vm281_vm11 = vcmp.gt.f32.partialorder %v3271_v39, %v1380_v7  ;;  %vm349_vm0 = vcmp.gt.f32.partialorder %v3271_v39, %v1395_v12 }
  0xf7   : > { %1228 = vst [vmem:[%s1581_s24 + $0xe0] sm:$0xff] %v1196_v58  ;;  %v722_v1 = vsel %vm688_vm7, %v1477_v40, %v654_v59  ;;  %vm960_vm1 = vcmp.gt.f32.partialorder %v3212_v14, %v1530_v57  ;;  %v247_v61 = vsel %vm213_vm10, %v1372_v5, 0.0  ;;  %vm417_vm2 = vcmp.gt.f32.partialorder %v3271_v39, %v1410_v17 }
  0xf8   : > { %v790_v44 = vsel %vm756_vm15, %v1492_v45, %v722_v1  ;;  %vm1028_vm3 = vcmp.gt.f32.partialorder %v3212_v14, %v1545_v62  ;;  %v315_v54 = vsel %vm281_vm11, %v1387_v10, %v247_v61  ;;  %vm485_vm12 = vcmp.gt.f32.partialorder %v3271_v39, %v1425_v22 }
  0xf9   : > { %v858_v6 = vsel %vm824_vm8, %v1507_v50, %v790_v44  ;;  %vm1096_vm4 = vcmp.gt.f32.partialorder %v3212_v14, %v1560_v11  ;;  %v383_v43 = vsel %vm349_vm0, %v1402_v15, %v315_v54  ;;  %vm553_vm5 = vcmp.gt.f32.partialorder %v3271_v39, %v1440_v27 }
  0xfa   : > { %v926_v13 = vsel %vm892_vm9, %v1522_v55, %v858_v6  ;;  %vm1164_vm13 = vcmp.gt.f32.partialorder %v3212_v14, %v1584_v21  ;;  %v451_v63 = vsel %vm417_vm2, %v1417_v20, %v383_v43  ;;  %vm621_vm14 = vcmp.gt.f32.partialorder %v3271_v39, %v1455_v32 }
  0xfb   : > { %v994_v19 = vsel %vm960_vm1, %v1537_v60, %v926_v13  ;;  %v519_v16 = vsel %vm485_vm12, %v1432_v25, %v451_v63  ;;  %vm689_vm6 = vcmp.gt.f32.partialorder %v3271_v39, %v1470_v37  ;;  %vm757_vm7 = vcmp.gt.f32.partialorder %v3271_v39, %v1485_v42 }
  0xfc   : > { %v1062_v51 = vsel %vm1028_vm3, %v1552_v8, %v994_v19  ;;  %v587_v14 = vsel %vm553_vm5, %v1447_v30, %v519_v16  ;;  %vm825_vm15 = vcmp.gt.f32.partialorder %v3271_v39, %v1500_v47  ;;  %vm893_vm8 = vcmp.gt.f32.partialorder %v3271_v39, %v1515_v52 }
  0xfd   : > { %v1130_v9 = vsel %vm1096_vm4, %v1570_v18, %v1062_v51  ;;  %v655_v23 = vsel %vm621_vm14, %v1462_v35, %v587_v14  ;;  %vm214_vm9 = vcmp.gt.f32.partialorder %v180_v24, %v1364_v3  ;;  %vm282_vm10 = vcmp.gt.f32.partialorder %v180_v24, %v1380_v7 }
  0xfe   : > { %v1197_v31 = vsel %vm1164_vm13, %v1368_v4, %v1130_v9  ;;  %v723_v33 = vsel %vm689_vm6, %v1477_v40, %v655_v23  ;;  %v248_v29 = vsel %vm214_vm9, %v1372_v5, 0.0  ;;  %vm350_vm11 = vcmp.gt.f32.partialorder %v180_v24, %v1395_v12 }
  0xff   : > { %1229 = vst [vmem:[%s1581_s24 + $0xe8] sm:$0xff] %v1197_v31  ;;  %vm418_vm0 = vcmp.gt.f32.partialorder %v180_v24, %v1410_v17  ;;  %v791_v28 = vsel %vm757_vm7, %v1492_v45, %v723_v33  ;;  %vm961_vm1 = vcmp.gt.f32.partialorder %v3271_v39, %v1530_v57  ;;  %v316_v38 = vsel %vm282_vm10, %v1387_v10, %v248_v29 }
 0x100   : > { %vm486_vm2 = vcmp.gt.f32.partialorder %v180_v24, %v1425_v22  ;;  %v859_v3 = vsel %vm825_vm15, %v1507_v50, %v791_v28  ;;  %vm1029_vm3 = vcmp.gt.f32.partialorder %v3271_v39, %v1545_v62  ;;  %v384_v5 = vsel %vm350_vm11, %v1402_v15, %v316_v38 }
 0x101   : > { %vm554_vm12 = vcmp.gt.f32.partialorder %v180_v24, %v1440_v27  ;;  %v927_v7 = vsel %vm893_vm8, %v1522_v55, %v859_v3  ;;  %vm1097_vm4 = vcmp.gt.f32.partialorder %v3271_v39, %v1560_v11  ;;  %v452_v10 = vsel %vm418_vm0, %v1417_v20, %v384_v5 }
 0x102   : > { %vm622_vm5 = vcmp.gt.f32.partialorder %v180_v24, %v1455_v32  ;;  %v995_v12 = vsel %vm961_vm1, %v1537_v60, %v927_v7  ;;  %vm1165_vm13 = vcmp.gt.f32.partialorder %v3271_v39, %v1584_v21  ;;  %v520_v15 = vsel %vm486_vm2, %v1432_v25, %v452_v10 }
 0x103   : > { %vm690_vm14 = vcmp.gt.f32.partialorder %v180_v24, %v1470_v37  ;;  %v1063_v17 = vsel %vm1029_vm3, %v1552_v8, %v995_v12  ;;  %v588_v22 = vsel %vm554_vm12, %v1447_v30, %v520_v15  ;;  %vm758_vm6 = vcmp.gt.f32.partialorder %v180_v24, %v1485_v42 }
 0x104   : > { %v1131_v27 = vsel %vm1097_vm4, %v1570_v18, %v1063_v17  ;;  %v656_v20 = vsel %vm622_vm5, %v1462_v35, %v588_v22  ;;  %vm826_vm7 = vcmp.gt.f32.partialorder %v180_v24, %v1500_v47  ;;  %vm894_vm15 = vcmp.gt.f32.partialorder %v180_v24, %v1515_v52 }
 0x105   : > { %v1198_v32 = vsel %vm1165_vm13, %v1368_v4, %v1131_v27  ;;  %v724_v0 = vsel %vm690_vm14, %v1477_v40, %v656_v20  ;;  %vm962_vm8 = vcmp.gt.f32.partialorder %v180_v24, %v1530_v57  ;;  %vm1030_vm9 = vcmp.gt.f32.partialorder %v180_v24, %v1545_v62 }
 0x106   : > { %1230 = vst [vmem:[%s1581_s24 + $0xf0] sm:$0xff] %v1198_v32  ;;  %v792_v25 = vsel %vm758_vm6, %v1492_v45, %v724_v0  ;;  %vm1098_vm10 = vcmp.gt.f32.partialorder %v180_v24, %v1560_v11  ;;  %vm1166_vm11 = vcmp.gt.f32.partialorder %v180_v24, %v1584_v21 }
 0x107   : > { %v860_v30 = vsel %vm826_vm7, %v1507_v50, %v792_v25 }
 0x108   : > { %v928_v35 = vsel %vm894_vm15, %v1522_v55, %v860_v30 }
 0x109   : > { %v996_v37 = vsel %vm962_vm8, %v1537_v60, %v928_v35 }
 0x10a   : > { %v1064_v40 = vsel %vm1030_vm9, %v1552_v8, %v996_v37 }
 0x10b   : > { %v1132_v42 = vsel %vm1098_vm10, %v1570_v18, %v1064_v40 }
 0x10c   : > { %v1199_v45 = vsel %vm1166_vm11, %v1368_v4, %v1132_v42 }
 0x10d   : > { %1231 = vst [vmem:[%s1581_s24 + $0xf8] sm:$0xff] %v1199_v45 }
 0x10e PF: > { %s13_s11 = sadd.s32 1, %s1313_s11  }
 0x10f   : > { %p10_p4 = scmp.ge.s32.totalorder %s13_s11, 6  }
 0x111   :  { %12 = sbr.rel (!%p10_p4) target bundleno = 2 (0x2), region = 58 }

</bundles_post_ra>
